<compile_context>
chip_gen: v6e
topology: v6e:2x2x1
jax: 0.10.0
libtpu: 0.0.40
codegen_flags: <defaults>
</compile_context>

<pallas_src>
import functools

import numpy as np
import jax
import jax.numpy as jnp
from jax import lax
from jax.experimental import pallas as pl
from jax.experimental.pallas import tpu as pltpu


# ---------------------------------------------------------------------------
# Kernel 1: lane-dense pointwise conv   out = PReLU(x @ w + b)
# (4 pixels folded into the column dim so the output is 4*C = 128 lanes wide)
# ---------------------------------------------------------------------------
def _mm_prelu_kernel(x_ref, w_ref, b_ref, alpha_ref, o_ref):
    y = jnp.dot(x_ref[...], w_ref[...], preferred_element_type=jnp.float32)
    y = y + b_ref[...]
    a = alpha_ref[0, 0]
    o_ref[...] = jnp.where(y > 0, y, a * y).astype(o_ref.dtype)


def pointwise_conv_prelu(x2d, w, b, alpha, out_dtype=jnp.bfloat16, tm=256):
    """x2d: [M, K] bf16, w: [K, N] bf16, b: [1, N] f32, alpha: [1, 1] f32."""
    M, K = x2d.shape
    _, Nout = w.shape
    Mp = pl.cdiv(M, tm) * tm
    if Mp != M:
        x2d = jnp.pad(x2d, ((0, Mp - M), (0, 0)))
    flops = int(2 * Mp * K * Nout)
    bytes_acc = int(Mp * K * 2 + K * Nout * 2 + Mp * Nout * 2 + Nout * 4)
    out = pl.pallas_call(
        _mm_prelu_kernel,
        out_shape=jax.ShapeDtypeStruct((Mp, Nout), out_dtype),
        grid=(Mp // tm,),
        in_specs=[
            pl.BlockSpec((tm, K), lambda i: (i, 0)),
            pl.BlockSpec((K, Nout), lambda i: (0, 0)),
            pl.BlockSpec((1, Nout), lambda i: (0, 0)),
            pl.BlockSpec((1, 1), lambda i: (0, 0),
                         memory_space=pltpu.MemorySpace.SMEM),
        ],
        out_specs=pl.BlockSpec((tm, Nout), lambda i: (i, 0)),
        compiler_params=pltpu.CompilerParams(
            dimension_semantics=("parallel",)),
        cost_estimate=pl.CostEstimate(flops=flops, transcendentals=0,
                                      bytes_accessed=bytes_acc),
    )(x2d, w, b, alpha)
    return out[:M]


# ---------------------------------------------------------------------------
# Kernel 2: fused 3x3-neighborhood conv in phase form
#   grid = (N, H, 3 tap rows);  per step:  acc += x_row_slice @ w[tap]
#   finalize at last tap:       out = PReLU(acc + b) + sign * res
# Used for up_conv1 / up_conv3 (deconv, n_ex=1, ex pre-folded into channels)
# and up_conv2 (stride-4 conv expressed on the 16-phase layout, n_ex=3).
# ---------------------------------------------------------------------------
def _tap_stage_kernel(x_ref, w_ref, b_ref, alpha_ref, *rest,
                      out_w, n_ex, has_res, res_sign):
    if has_res:
        res_ref, o_ref, acc_ref = rest
    else:
        res_ref = None
        o_ref, acc_ref = rest

    t = pl.program_id(2)                      # tap row (ey), reduction axis

    @pl.when(t == 0)
    def _init():
        acc_ref[...] = jnp.zeros_like(acc_ref)

    for ex in range(n_ex):                    # static unroll over tap columns
        if n_ex == 1:
            xs = x_ref[...]                   # [W, Kin]
        else:
            xs = x_ref[ex:ex + out_w, :]      # static shifted slice of the row
        wk = w_ref[t * n_ex + ex]             # [Kin, Nout] (weights resident)
        acc_ref[...] += jnp.dot(xs, wk, preferred_element_type=jnp.float32)

    @pl.when(t == pl.num_programs(2) - 1)
    def _finish():
        y = acc_ref[...] + b_ref[...]
        a = alpha_ref[0, 0]
        y = jnp.where(y > 0, y, a * y)        # PReLU (single shared alpha)
        if has_res:
            y = y + res_sign * res_ref[...].astype(jnp.float32)
        o_ref[...] = y.astype(o_ref.dtype)


def tap_conv_stage(x_img, w_taps, b, alpha, *, n_ex, out_w, nout,
                   out_dtype, res=None, res_sign=1.0):
    """x_img:  [N, H+2, Win, Kin] bf16 (1-row/col padded input)
       w_taps: [3*n_ex, Kin, nout] bf16 (resident in VMEM, constant index)
       b: [1, nout] f32,  alpha: [1, 1] f32,  res: optional [N, H, out_w, nout]
    """
    N, Hp, Win, Kin = x_img.shape
    H = Hp - 2
    has_res = res is not None
    kernel = functools.partial(_tap_stage_kernel, out_w=out_w, n_ex=n_ex,
                               has_res=has_res, res_sign=float(res_sign))

    in_specs = [
        # one padded image row per step; same row reused across shared taps
        pl.BlockSpec((None, None, Win, Kin), lambda n, j, t: (n, j + t, 0, 0)),
        # full weight block, constant index -> fetched once, stays in VMEM
        pl.BlockSpec((3 * n_ex, Kin, nout), lambda n, j, t: (0, 0, 0)),
        pl.BlockSpec((1, nout), lambda n, j, t: (0, 0)),
        pl.BlockSpec((1, 1), lambda n, j, t: (0, 0),
                     memory_space=pltpu.MemorySpace.SMEM),
    ]
    args = [x_img, w_taps, b, alpha]
    if has_res:
        in_specs.append(pl.BlockSpec((None, None, out_w, nout),
                                     lambda n, j, t: (n, j, 0, 0)))
        args.append(res)

    flops = int(2 * N * H * out_w * (3 * n_ex * Kin) * nout)
    bytes_acc = int(3 * N * Hp * Win * Kin * 2 + 3 * n_ex * Kin * nout * 2
                    + N * H * out_w * nout * (4 if has_res else 2)
                    + nout * 4)

    return pl.pallas_call(
        kernel,
        out_shape=jax.ShapeDtypeStruct((N, H, out_w, nout), out_dtype),
        grid=(N, H, 3),
        in_specs=in_specs,
        out_specs=pl.BlockSpec((None, None, out_w, nout),
                               lambda n, j, t: (n, j, 0, 0)),
        scratch_shapes=[pltpu.VMEM((out_w, nout), jnp.float32)],
        compiler_params=pltpu.CompilerParams(
            dimension_semantics=("parallel", "parallel", "arbitrary")),
        cost_estimate=pl.CostEstimate(flops=flops, transcendentals=0,
                                      bytes_accessed=bytes_acc),
    )(*args)


# ---------------------------------------------------------------------------
# Weight re-layout (host side, once)
# ---------------------------------------------------------------------------
def build_deconv_tap_weights(w_t):
    """ConvTranspose2d weight [Cin, Cout, 8, 8] (stride 4, pad 2) ->
    [3, 3*Cin, 16*Cout]:  w[ey][ex*Cin + ci, (ry*4+rx)*Cout + co] maps the
    input pixel (j+ey-1, i+ex-1) to output phase (ry, rx) of low-res (j, i)."""
    w = np.asarray(w_t, np.float32)
    Cin, Cout, K, _ = w.shape
    Wt = np.zeros((3, 3, Cin, 16, Cout), np.float32)
    for ey in range(3):
        for ex in range(3):
            for ry in range(4):
                for rx in range(4):
                    ky = 4 * (1 - ey) + ry + 2
                    kx = 4 * (1 - ex) + rx + 2
                    if 0 <= ky < K and 0 <= kx < K:
                        Wt[ey, ex, :, ry * 4 + rx, :] = w[:, :, ky, kx]
    return Wt.reshape(3, 3 * Cin, 16 * Cout)


def build_conv_phase_tap_weights(w_t):
    """Conv2d weight [Cout, Cin, 8, 8] (stride 4, pad 3) acting on the 4x
    upsampled image, re-expressed on the 16-phase layout -> [9, 16*Cin, Cout];
    tap ey*3+ex reads phase-form input pixel (j+ey-1, i+ex-1)."""
    w = np.asarray(w_t, np.float32)
    Cout, Cin, K, _ = w.shape
    Wt = np.zeros((3, 3, 16, Cin, Cout), np.float32)
    for ey in range(3):
        for ex in range(3):
            for ry in range(4):
                for rx in range(4):
                    ky = 4 * (ey - 1) + ry + 3
                    kx = 4 * (ex - 1) + rx + 3
                    if 0 <= ky < K and 0 <= kx < K:
                        Wt[ey, ex, ry * 4 + rx, :, :] = w[:, :, ky, kx].T
    return Wt.reshape(9, 16 * Cin, Cout)


def prepare_params(p):
    bf = jnp.bfloat16
    w1 = np.asarray(p['conv_w'], np.float32)[:, :, 0, 0].T          # [Cin, C]
    kp = {}
    # 1x1 conv, 4-pixel column folding -> block-diagonal [4*Cin, 4*C]
    kp['w1'] = jnp.asarray(np.kron(np.eye(4, dtype=np.float32), w1), bf)
    kp['b1'] = jnp.asarray(np.tile(np.asarray(p['conv_b'], np.float32), 4))[None, :]
    kp['a_conv'] = jnp.reshape(jnp.asarray(p['conv_a'], jnp.float32), (1, 1))

    kp['wt1'] = jnp.asarray(build_deconv_tap_weights(p['up1_w']), bf)   # [3, 3C, 16C]
    kp['bt1'] = jnp.asarray(np.tile(np.asarray(p['up1_b'], np.float32), 16))[None, :]
    kp['a_up1'] = jnp.reshape(jnp.asarray(p['up1_a'], jnp.float32), (1, 1))

    kp['wd2'] = jnp.asarray(build_conv_phase_tap_weights(p['up2_w']), bf)  # [9, 16C, C]
    kp['b2'] = jnp.asarray(np.asarray(p['up2_b'], np.float32))[None, :]
    kp['a_up2'] = jnp.reshape(jnp.asarray(p['up2_a'], jnp.float32), (1, 1))

    kp['wt3'] = jnp.asarray(build_deconv_tap_weights(p['up3_w']), bf)
    kp['bt3'] = jnp.asarray(np.tile(np.asarray(p['up3_b'], np.float32), 16))[None, :]
    kp['a_up3'] = jnp.reshape(jnp.asarray(p['up3_a'], jnp.float32), (1, 1))
    return kp


# ---------------------------------------------------------------------------
# D_UpBlock forward (Pallas path)
# ---------------------------------------------------------------------------
@jax.jit
def d_upblock_forward(x_nchw, kp):
    N, Cin, H, W = x_nchw.shape
    C = kp['wt1'].shape[1] // 3
    bf = jnp.bfloat16

    # --- conv (1x1) + PReLU : lane-dense 128-wide output --------------------
    x_nhwc = jnp.transpose(x_nchw.astype(bf), (0, 2, 3, 1))
    M = N * H * W
    M4 = pl.cdiv(M, 4)
    x_flat = x_nhwc.reshape(M, Cin)
    if 4 * M4 != M:
        x_flat = jnp.pad(x_flat, ((0, 4 * M4 - M), (0, 0)))
    x4 = x_flat.reshape(M4, 4 * Cin)
    xprime4 = pointwise_conv_prelu(x4, kp['w1'], kp['b1'], kp['a_conv'],
                                   out_dtype=bf)                 # [M4, 4C]
    xprime = xprime4.reshape(4 * M4, C)[:M].reshape(N, H, W, C)  # bf16

    # --- up_conv1 : ConvT(8,4,2) + PReLU, phase-form output ------------------
    # (tap-row reduction in the kernel; ex shifts pre-folded into 3C channels)
    xp_pad = jnp.pad(xprime, ((0, 0), (1, 1), (1, 1), (0, 0)))
    x_cols1 = jnp.concatenate([xp_pad[:, :, ex:ex + W, :] for ex in range(3)],
                              axis=-1)                           # [N, H+2, W, 3C]
    h0_raw = tap_conv_stage(x_cols1, kp['wt1'], kp['bt1'], kp['a_up1'],
                            n_ex=1, out_w=W, nout=16 * C, out_dtype=bf)

    # --- up_conv2 : Conv(8,4,3) on the (never materialized) 4Hx4W image ------
    # works directly on the 16-phase layout; fuses the "l0 - x" subtraction.
    h0_pad = jnp.pad(h0_raw, ((0, 0), (1, 1), (1, 1), (0, 0)))   # [N, H+2, W+2, 16C]
    l0_minus_x = tap_conv_stage(h0_pad, kp['wd2'], kp['b2'], kp['a_up2'],
                                n_ex=3, out_w=W, nout=C, out_dtype=bf,
                                res=xprime, res_sign=-1.0)

    # --- up_conv3 : ConvT(8,4,2) + PReLU, fuses the final "+ h0" -------------
    l0_pad = jnp.pad(l0_minus_x, ((0, 0), (1, 1), (1, 1), (0, 0)))
    x_cols3 = jnp.concatenate([l0_pad[:, :, ex:ex + W, :] for ex in range(3)],
                              axis=-1)
    out_raw = tap_conv_stage(x_cols3, kp['wt3'], kp['bt3'], kp['a_up3'],
                             n_ex=1, out_w=W, nout=16 * C,
                             out_dtype=jnp.float32,
                             res=h0_raw, res_sign=1.0)

    # --- phase layout -> NCHW in one transpose -------------------------------
    out = out_raw.reshape(N, H, W, 4, 4, C)
    out = jnp.transpose(out, (0, 5, 1, 3, 2, 4)).reshape(N, C, 4 * H, 4 * W)
    return out


# ---------------------------------------------------------------------------
# Pure-JAX (lax.conv) reference of the PyTorch forward, for verification
# ---------------------------------------------------------------------------
def _prelu(x, a):
    return jnp.where(x > 0, x, a * x)


def ref_forward(x, p):
    dn = ('NCHW', 'OIHW', 'NCHW')
    P = lax.Precision.HIGHEST

    xc = lax.conv_general_dilated(x, p['conv_w'], (1, 1), 'VALID',
                                  dimension_numbers=dn, precision=P)
    xc = _prelu(xc + p['conv_b'].reshape(1, -1, 1, 1), p['conv_a'])

    def deconv(v, w, b, a):
        # ConvTranspose2d(k=8, s=4, p=2): dilate input by 4, pad 5, flipped W.
        wc = jnp.flip(jnp.transpose(w, (1, 0, 2, 3)), axis=(2, 3))
        y = lax.conv_general_dilated(v, wc, (1, 1), [(5, 5), (5, 5)],
                                     lhs_dilation=(4, 4),
                                     dimension_numbers=dn, precision=P)
        return _prelu(y + b.reshape(1, -1, 1, 1), a)

    def dconv(v, w, b, a):
        y = lax.conv_general_dilated(v, w, (4, 4), [(3, 3), (3, 3)],
                                     dimension_numbers=dn, precision=P)
        return _prelu(y + b.reshape(1, -1, 1, 1), a)

    h0 = deconv(xc, p['up1_w'], p['up1_b'], p['up1_a'])
    l0 = dconv(h0, p['up2_w'], p['up2_b'], p['up2_a'])
    h1 = deconv(l0 - xc, p['up3_w'], p['up3_b'], p['up3_a'])
    return h1 + h0


# ---------------------------------------------------------------------------
if __name__ == "__main__":
    num_filter, num_stages = 32, 2
    N, H, W = 2, 16, 16
    C, Cin = num_filter, num_filter * num_stages

    key = jax.random.PRNGKey(0)
    ks = jax.random.split(key, 10)
    params = dict(
        conv_w=jax.random.normal(ks[0], (C, Cin, 1, 1), jnp.float32) * 0.05,
        conv_b=jax.random.normal(ks[1], (C,), jnp.float32) * 0.05,
        conv_a=jnp.float32(0.25),
        up1_w=jax.random.normal(ks[2], (C, C, 8, 8), jnp.float32) * 0.05,  # ConvT: [in,out,kh,kw]
        up1_b=jax.random.normal(ks[3], (C,), jnp.float32) * 0.05,
        up1_a=jnp.float32(0.25),
        up2_w=jax.random.normal(ks[4], (C, C, 8, 8), jnp.float32) * 0.05,  # Conv:  [out,in,kh,kw]
        up2_b=jax.random.normal(ks[5], (C,), jnp.float32) * 0.05,
        up2_a=jnp.float32(0.25),
        up3_w=jax.random.normal(ks[6], (C, C, 8, 8), jnp.float32) * 0.05,
        up3_b=jax.random.normal(ks[7], (C,), jnp.float32) * 0.05,
        up3_a=jnp.float32(0.25),
    )
    x = jax.random.normal(ks[8], (N, Cin, H, W), jnp.float32)

    kp = prepare_params(params)

    out = jax.block_until_ready(d_upblock_forward(x, kp))
    assert out.shape == (N, C, 4 * H, 4 * W)

    ref = jax.block_until_ready(ref_forward(x, params))
    np.testing.assert_allclose(np.asarray(out), np.asarray(ref),
                               rtol=3e-2, atol=3e-2)
    print("KERNEL_OK")
</pallas_src>

<mosaic_0001>
module attributes {stable_mosaic.version = 11 : i64} {
  func.func @_mm_prelu_kernel(%arg0: i32, %arg1: memref<256x256xbf16, #tpu.memory_space<vmem>>, %arg2: memref<256x128xbf16, #tpu.memory_space<vmem>>, %arg3: memref<1x128xf32, #tpu.memory_space<vmem>>, %arg4: memref<1x1xf32, #tpu.memory_space<smem>>, %arg5: memref<256x128xbf16, #tpu.memory_space<vmem>>) attributes {dimension_semantics = [#tpu.dimension_semantics<parallel>], iteration_bounds = array<i64: 1>, scalar_prefetch = 0 : i64, scratch_operands = 0 : i64, tpu.core_type = #tpu.core_type<tc>, window_params = [{transform_indices = @transform_0, window_bounds = array<i64: 256, 256>}, {pipeline_mode = #tpu.pipeline_mode<synchronous>, transform_indices = @transform_1, window_bounds = array<i64: 256, 128>}, {pipeline_mode = #tpu.pipeline_mode<synchronous>, transform_indices = @transform_2, window_bounds = array<i64: 1, 128>}, {transform_indices = @transform_3, window_bounds = array<i64: 1, 1>}, {transform_indices = @transform_4, window_bounds = array<i64: 256, 128>}]} {
    %c0 = arith.constant 0 : index
    %c0_0 = arith.constant 0 : index
    %0 = vector.load %arg1[%c0, %c0_0] : memref<256x256xbf16, #tpu.memory_space<vmem>>, vector<256x256xbf16>
    %c0_1 = arith.constant 0 : index
    %c0_2 = arith.constant 0 : index
    %1 = vector.load %arg2[%c0_1, %c0_2] : memref<256x128xbf16, #tpu.memory_space<vmem>>, vector<256x128xbf16>
    %cst = arith.constant dense<0.000000e+00> : vector<256x128xf32>
    %2 = tpu.matmul %0, %1, %cst {dimension_numbers = #tpu.dot_dimension_numbers<[1], [0], [0], [1], [0, 0, 1, 1], [], []>} : vector<256x256xbf16>, vector<256x128xbf16>, vector<256x128xf32> -> vector<256x128xf32>
    %c0_3 = arith.constant 0 : index
    %c0_4 = arith.constant 0 : index
    %3 = vector.load %arg3[%c0_3, %c0_4] : memref<1x128xf32, #tpu.memory_space<vmem>>, vector<1x128xf32>
    %4 = vector.broadcast %3 : vector<1x128xf32> to vector<256x128xf32>
    %5 = arith.addf %2, %4 : vector<256x128xf32>
    %c0_5 = arith.constant 0 : index
    %c0_6 = arith.constant 0 : index
    %6 = memref.load %arg4[%c0_5, %c0_6] : memref<1x1xf32, #tpu.memory_space<smem>>
    %cst_7 = arith.constant 0.000000e+00 : f32
    %7 = vector.broadcast %cst_7 : f32 to vector<256x128xf32>
    %8 = arith.cmpf ogt, %5, %7 : vector<256x128xf32>
    %9 = vector.broadcast %6 : f32 to vector<256x128xf32>
    %10 = arith.mulf %9, %5 : vector<256x128xf32>
    %11 = arith.select %8, %5, %10 : vector<256x128xi1>, vector<256x128xf32>
    %12 = arith.truncf %11 : vector<256x128xf32> to vector<256x128xbf16>
    %c0_8 = arith.constant 0 : index
    %c0_9 = arith.constant 0 : index
    %13 = vector.load %arg5[%c0_8, %c0_9] : memref<256x128xbf16, #tpu.memory_space<vmem>>, vector<256x128xbf16>
    tpu.vector_store %arg5[%c0_8, %c0_9], %12 {strides = array<i32>} : memref<256x128xbf16, #tpu.memory_space<vmem>>, vector<256x128xbf16>,
    return
  }
  func.func @transform_0(%arg0: i32) -> (i32, i32) {
    %c0_i32 = arith.constant 0 : i32
    %c0_i32_0 = arith.constant 0 : i32
    return %arg0, %c0_i32 : i32, i32
  }
  func.func @transform_1(%arg0: i32) -> (i32, i32) {
    %c0_i32 = arith.constant 0 : i32
    %c0_i32_0 = arith.constant 0 : i32
    %c0_i32_1 = arith.constant 0 : i32
    return %c0_i32, %c0_i32_0 : i32, i32
  }
  func.func @transform_2(%arg0: i32) -> (i32, i32) {
    %c0_i32 = arith.constant 0 : i32
    %c0_i32_0 = arith.constant 0 : i32
    %c0_i32_1 = arith.constant 0 : i32
    return %c0_i32, %c0_i32_0 : i32, i32
  }
  func.func @transform_3(%arg0: i32) -> (i32, i32) {
    %c0_i32 = arith.constant 0 : i32
    %c0_i32_0 = arith.constant 0 : i32
    %c0_i32_1 = arith.constant 0 : i32
    return %c0_i32, %c0_i32_0 : i32, i32
  }
  func.func @transform_4(%arg0: i32) -> (i32, i32) {
    %c0_i32 = arith.constant 0 : i32
    %c0_i32_0 = arith.constant 0 : i32
    return %arg0, %c0_i32 : i32, i32
  }
}

module attributes {stable_mosaic.version = 11 : i64} {
  func.func @_tap_stage_kernel(%arg0: i32, %arg1: i32, %arg2: i32, %arg3: memref<1x1x16x96xbf16, #tpu.memory_space<vmem>>, %arg4: memref<3x96x512xbf16, #tpu.memory_space<vmem>>, %arg5: memref<1x512xf32, #tpu.memory_space<vmem>>, %arg6: memref<1x1xf32, #tpu.memory_space<smem>>, %arg7: memref<1x1x16x512xbf16, #tpu.memory_space<vmem>>, %arg8: memref<16x512xf32, #tpu.memory_space<vmem>>) attributes {dimension_semantics = [#tpu.dimension_semantics<parallel>, #tpu.dimension_semantics<parallel>, #tpu.dimension_semantics<arbitrary>], iteration_bounds = array<i64: 2, 16, 3>, scalar_prefetch = 0 : i64, scratch_operands = 1 : i64, tpu.core_type = #tpu.core_type<tc>, window_params = [{transform_indices = @transform_0, window_bounds = array<i64: 1, 1, 16, 96>}, {pipeline_mode = #tpu.pipeline_mode<synchronous>, transform_indices = @transform_1, window_bounds = array<i64: 3, 96, 512>}, {pipeline_mode = #tpu.pipeline_mode<synchronous>, transform_indices = @transform_2, window_bounds = array<i64: 1, 512>}, {transform_indices = @transform_3, window_bounds = array<i64: 1, 1>}, {transform_indices = @transform_4, window_bounds = array<i64: 1, 1, 16, 512>}]} {
    %c0_i32 = arith.constant 0 : i32
    %0 = arith.cmpi eq, %arg2, %c0_i32 : i32
    %1 = arith.extui %0 : i1 to i32
    %c0_i32_0 = arith.constant 0 : i32
    %2 = arith.cmpi ne, %1, %c0_i32_0 : i32
    scf.if %2 {
      %cst_12 = arith.constant 0.000000e+00 : f32
      %17 = vector.broadcast %cst_12 : f32 to vector<16x512xf32>
      %c0_13 = arith.constant 0 : index
      %c0_14 = arith.constant 0 : index
      %18 = vector.load %arg8[%c0_13, %c0_14] : memref<16x512xf32, #tpu.memory_space<vmem>>, vector<16x512xf32>
      tpu.vector_store %arg8[%c0_13, %c0_14], %17 {strides = array<i32>} : memref<16x512xf32, #tpu.memory_space<vmem>>, vector<16x512xf32>,
    } else {
    }
    %c0 = arith.constant 0 : index
    %c0_1 = arith.constant 0 : index
    %c0_2 = arith.constant 0 : index
    %c0_3 = arith.constant 0 : index
    %3 = vector.load %arg3[%c0, %c0_1, %c0_2, %c0_3] : memref<1x1x16x96xbf16, #tpu.memory_space<vmem>>, vector<1x1x16x96xbf16>
    %4 = vector.shape_cast %3 : vector<1x1x16x96xbf16> to vector<16x96xbf16>
    %c1_i32 = arith.constant 1 : i32
    %5 = arith.muli %arg2, %c1_i32 : i32
    %c0_i32_4 = arith.constant 0 : i32
    %6 = arith.addi %5, %c0_i32_4 : i32
    %7 = arith.index_cast %6 : i32 to index
    %c0_5 = arith.constant 0 : index
    %c0_6 = arith.constant 0 : index
    %8 = vector.load %arg4[%7, %c0_5, %c0_6] : memref<3x96x512xbf16, #tpu.memory_space<vmem>>, vector<1x96x512xbf16>
    %9 = vector.shape_cast %8 : vector<1x96x512xbf16> to vector<96x512xbf16>
    %c0_7 = arith.constant 0 : index
    %c0_8 = arith.constant 0 : index
    %10 = vector.load %arg8[%c0_7, %c0_8] : memref<16x512xf32, #tpu.memory_space<vmem>>, vector<16x512xf32>
    %cst = arith.constant dense<0.000000e+00> : vector<16x512xf32>
    %11 = tpu.matmul %4, %9, %cst {dimension_numbers = #tpu.dot_dimension_numbers<[1], [0], [0], [1], [0, 0, 1, 1], [], []>} : vector<16x96xbf16>, vector<96x512xbf16>, vector<16x512xf32> -> vector<16x512xf32>
    %12 = arith.addf %10, %11 : vector<16x512xf32>
    %c0_9 = arith.constant 0 : index
    %c0_10 = arith.constant 0 : index
    %13 = vector.load %arg8[%c0_9, %c0_10] : memref<16x512xf32, #tpu.memory_space<vmem>>, vector<16x512xf32>
    tpu.vector_store %arg8[%c0_9, %c0_10], %12 {strides = array<i32>} : memref<16x512xf32, #tpu.memory_space<vmem>>, vector<16x512xf32>,
    %c2_i32 = arith.constant 2 : i32
    %14 = arith.cmpi eq, %arg2, %c2_i32 : i32
    %15 = arith.extui %14 : i1 to i32
    %c0_i32_11 = arith.constant 0 : i32
    %16 = arith.cmpi ne, %15, %c0_i32_11 : i32
    scf.if %16 {
      %c0_12 = arith.constant 0 : index
      %c0_13 = arith.constant 0 : index
      %17 = vector.load %arg8[%c0_12, %c0_13] : memref<16x512xf32, #tpu.memory_space<vmem>>, vector<16x512xf32>
      %c0_14 = arith.constant 0 : index
      %c0_15 = arith.constant 0 : index
      %18 = vector.load %arg5[%c0_14, %c0_15] : memref<1x512xf32, #tpu.memory_space<vmem>>, vector<1x512xf32>
      %19 = vector.broadcast %18 : vector<1x512xf32> to vector<16x512xf32>
      %20 = arith.addf %17, %19 : vector<16x512xf32>
      %c0_16 = arith.constant 0 : index
      %c0_17 = arith.constant 0 : index
      %21 = memref.load %arg6[%c0_16, %c0_17] : memref<1x1xf32, #tpu.memory_space<smem>>
      %cst_18 = arith.constant 0.000000e+00 : f32
      %22 = vector.broadcast %cst_18 : f32 to vector<16x512xf32>
      %23 = arith.cmpf ogt, %20, %22 : vector<16x512xf32>
      %24 = vector.broadcast %21 : f32 to vector<16x512xf32>
      %25 = arith.mulf %24, %20 : vector<16x512xf32>
      %26 = arith.select %23, %20, %25 : vector<16x512xi1>, vector<16x512xf32>
      %27 = arith.truncf %26 : vector<16x512xf32> to vector<16x512xbf16>
      %c0_19 = arith.constant 0 : index
      %c0_20 = arith.constant 0 : index
      %c0_21 = arith.constant 0 : index
      %c0_22 = arith.constant 0 : index
      %28 = vector.load %arg7[%c0_19, %c0_20, %c0_21, %c0_22] : memref<1x1x16x512xbf16, #tpu.memory_space<vmem>>, vector<1x1x16x512xbf16>
      %29 = vector.shape_cast %28 : vector<1x1x16x512xbf16> to vector<16x512xbf16>
      %30 = vector.shape_cast %27 : vector<16x512xbf16> to vector<1x1x16x512xbf16>
      tpu.vector_store %arg7[%c0_19, %c0_20, %c0_21, %c0_22], %30 {strides = array<i32>} : memref<1x1x16x512xbf16, #tpu.memory_space<vmem>>, vector<1x1x16x512xbf16>,
    } else {
    }
    return
  }
  func.func @transform_0(%arg0: i32, %arg1: i32, %arg2: i32) -> (i32, i32, i32, i32) {
    %0 = arith.addi %arg1, %arg2 : i32
    %c0_i32 = arith.constant 0 : i32
    %c0_i32_0 = arith.constant 0 : i32
    %c0_i32_1 = arith.constant 0 : i32
    return %arg0, %0, %c0_i32, %c0_i32_0 : i32, i32, i32, i32
  }
  func.func @transform_1(%arg0: i32, %arg1: i32, %arg2: i32) -> (i32, i32, i32) {
    %c0_i32 = arith.constant 0 : i32
    %c0_i32_0 = arith.constant 0 : i32
    %c0_i32_1 = arith.constant 0 : i32
    %c0_i32_2 = arith.constant 0 : i32
    return %c0_i32, %c0_i32_0, %c0_i32_1 : i32, i32, i32
  }
  func.func @transform_2(%arg0: i32, %arg1: i32, %arg2: i32) -> (i32, i32) {
    %c0_i32 = arith.constant 0 : i32
    %c0_i32_0 = arith.constant 0 : i32
    %c0_i32_1 = arith.constant 0 : i32
    return %c0_i32, %c0_i32_0 : i32, i32
  }
  func.func @transform_3(%arg0: i32, %arg1: i32, %arg2: i32) -> (i32, i32) {
    %c0_i32 = arith.constant 0 : i32
    %c0_i32_0 = arith.constant 0 : i32
    %c0_i32_1 = arith.constant 0 : i32
    return %c0_i32, %c0_i32_0 : i32, i32
  }
  func.func @transform_4(%arg0: i32, %arg1: i32, %arg2: i32) -> (i32, i32, i32, i32) {
    %c0_i32 = arith.constant 0 : i32
    %c0_i32_0 = arith.constant 0 : i32
    %c0_i32_1 = arith.constant 0 : i32
    return %arg0, %arg1, %c0_i32, %c0_i32_0 : i32, i32, i32, i32
  }
}

module attributes {stable_mosaic.version = 11 : i64} {
  func.func @_tap_stage_kernel(%arg0: i32, %arg1: i32, %arg2: i32, %arg3: memref<1x1x18x512xbf16, #tpu.memory_space<vmem>>, %arg4: memref<9x512x32xbf16, #tpu.memory_space<vmem>>, %arg5: memref<1x32xf32, #tpu.memory_space<vmem>>, %arg6: memref<1x1xf32, #tpu.memory_space<smem>>, %arg7: memref<1x1x16x32xbf16, #tpu.memory_space<vmem>>, %arg8: memref<1x1x16x32xbf16, #tpu.memory_space<vmem>>, %arg9: memref<16x32xf32, #tpu.memory_space<vmem>>) attributes {dimension_semantics = [#tpu.dimension_semantics<parallel>, #tpu.dimension_semantics<parallel>, #tpu.dimension_semantics<arbitrary>], iteration_bounds = array<i64: 2, 16, 3>, scalar_prefetch = 0 : i64, scratch_operands = 1 : i64, tpu.core_type = #tpu.core_type<tc>, window_params = [{transform_indices = @transform_0, window_bounds = array<i64: 1, 1, 18, 512>}, {pipeline_mode = #tpu.pipeline_mode<synchronous>, transform_indices = @transform_1, window_bounds = array<i64: 9, 512, 32>}, {pipeline_mode = #tpu.pipeline_mode<synchronous>, transform_indices = @transform_2, window_bounds = array<i64: 1, 32>}, {transform_indices = @transform_3, window_bounds = array<i64: 1, 1>}, {transform_indices = @transform_4, window_bounds = array<i64: 1, 1, 16, 32>}, {transform_indices = @transform_5, window_bounds = array<i64: 1, 1, 16, 32>}]} {
    %c0_i32 = arith.constant 0 : i32
    %0 = arith.cmpi eq, %arg2, %c0_i32 : i32
    %1 = arith.extui %0 : i1 to i32
    %c0_i32_0 = arith.constant 0 : i32
    %2 = arith.cmpi ne, %1, %c0_i32_0 : i32
    scf.if %2 {
      %cst_35 = arith.constant 0.000000e+00 : f32
      %39 = vector.broadcast %cst_35 : f32 to vector<16x32xf32>
      %c0_36 = arith.constant 0 : index
      %c0_37 = arith.constant 0 : index
      %40 = vector.load %arg9[%c0_36, %c0_37] : memref<16x32xf32, #tpu.memory_space<vmem>>, vector<16x32xf32>
      tpu.vector_store %arg9[%c0_36, %c0_37], %39 {strides = array<i32>} : memref<16x32xf32, #tpu.memory_space<vmem>>, vector<16x32xf32>,
    } else {
    }
    %c0 = arith.constant 0 : index
    %c0_1 = arith.constant 0 : index
    %c0_2 = arith.constant 0 : index
    %c0_3 = arith.constant 0 : index
    %3 = vector.load %arg3[%c0, %c0_1, %c0_2, %c0_3] : memref<1x1x18x512xbf16, #tpu.memory_space<vmem>>, vector<1x1x16x512xbf16>
    %4 = vector.shape_cast %3 : vector<1x1x16x512xbf16> to vector<16x512xbf16>
    %c3_i32 = arith.constant 3 : i32
    %5 = arith.muli %arg2, %c3_i32 : i32
    %c0_i32_4 = arith.constant 0 : i32
    %6 = arith.addi %5, %c0_i32_4 : i32
    %7 = arith.index_cast %6 : i32 to index
    %c0_5 = arith.constant 0 : index
    %c0_6 = arith.constant 0 : index
    %8 = vector.load %arg4[%7, %c0_5, %c0_6] : memref<9x512x32xbf16, #tpu.memory_space<vmem>>, vector<1x512x32xbf16>
    %9 = vector.shape_cast %8 : vector<1x512x32xbf16> to vector<512x32xbf16>
    %c0_7 = arith.constant 0 : index
    %c0_8 = arith.constant 0 : index
    %10 = vector.load %arg9[%c0_7, %c0_8] : memref<16x32xf32, #tpu.memory_space<vmem>>, vector<16x32xf32>
    %cst = arith.constant dense<0.000000e+00> : vector<16x32xf32>
    %11 = tpu.matmul %4, %9, %cst {dimension_numbers = #tpu.dot_dimension_numbers<[1], [0], [0], [1], [0, 0, 1, 1], [], []>} : vector<16x512xbf16>, vector<512x32xbf16>, vector<16x32xf32> -> vector<16x32xf32>
    %12 = arith.addf %10, %11 : vector<16x32xf32>
    %c0_9 = arith.constant 0 : index
    %c0_10 = arith.constant 0 : index
    %13 = vector.load %arg9[%c0_9, %c0_10] : memref<16x32xf32, #tpu.memory_space<vmem>>, vector<16x32xf32>
    tpu.vector_store %arg9[%c0_9, %c0_10], %12 {strides = array<i32>} : memref<16x32xf32, #tpu.memory_space<vmem>>, vector<16x32xf32>,
    %c0_11 = arith.constant 0 : index
    %c0_12 = arith.constant 0 : index
    %c1 = arith.constant 1 : index
    %c0_13 = arith.constant 0 : index
    %14 = vector.load %arg3[%c0_11, %c0_12, %c1, %c0_13] : memref<1x1x18x512xbf16, #tpu.memory_space<vmem>>, vector<1x1x16x512xbf16>
    %15 = vector.shape_cast %14 : vector<1x1x16x512xbf16> to vector<16x512xbf16>
    %c3_i32_14 = arith.constant 3 : i32
    %16 = arith.muli %arg2, %c3_i32_14 : i32
    %c1_i32 = arith.constant 1 : i32
    %17 = arith.addi %16, %c1_i32 : i32
    %18 = arith.index_cast %17 : i32 to index
    %c0_15 = arith.constant 0 : index
    %c0_16 = arith.constant 0 : index
    %19 = vector.load %arg4[%18, %c0_15, %c0_16] : memref<9x512x32xbf16, #tpu.memory_space<vmem>>, vector<1x512x32xbf16>
    %20 = vector.shape_cast %19 : vector<1x512x32xbf16> to vector<512x32xbf16>
    %c0_17 = arith.constant 0 : index
    %c0_18 = arith.constant 0 : index
    %21 = vector.load %arg9[%c0_17, %c0_18] : memref<16x32xf32, #tpu.memory_space<vmem>>, vector<16x32xf32>
    %cst_19 = arith.constant dense<0.000000e+00> : vector<16x32xf32>
    %22 = tpu.matmul %15, %20, %cst_19 {dimension_numbers = #tpu.dot_dimension_numbers<[1], [0], [0], [1], [0, 0, 1, 1], [], []>} : vector<16x512xbf16>, vector<512x32xbf16>, vector<16x32xf32> -> vector<16x32xf32>
    %23 = arith.addf %21, %22 : vector<16x32xf32>
    %c0_20 = arith.constant 0 : index
    %c0_21 = arith.constant 0 : index
    %24 = vector.load %arg9[%c0_20, %c0_21] : memref<16x32xf32, #tpu.memory_space<vmem>>, vector<16x32xf32>
    tpu.vector_store %arg9[%c0_20, %c0_21], %23 {strides = array<i32>} : memref<16x32xf32, #tpu.memory_space<vmem>>, vector<16x32xf32>,
    %c0_22 = arith.constant 0 : index
    %c0_23 = arith.constant 0 : index
    %c2 = arith.constant 2 : index
    %c0_24 = arith.constant 0 : index
    %25 = vector.load %arg3[%c0_22, %c0_23, %c2, %c0_24] : memref<1x1x18x512xbf16, #tpu.memory_space<vmem>>, vector<1x1x16x512xbf16>
    %26 = vector.shape_cast %25 : vector<1x1x16x512xbf16> to vector<16x512xbf16>
    %c3_i32_25 = arith.constant 3 : i32
    %27 = arith.muli %arg2, %c3_i32_25 : i32
    %c2_i32 = arith.constant 2 : i32
    %28 = arith.addi %27, %c2_i32 : i32
    %29 = arith.index_cast %28 : i32 to index
    %c0_26 = arith.constant 0 : index
    %c0_27 = arith.constant 0 : index
    %30 = vector.load %arg4[%29, %c0_26, %c0_27] : memref<9x512x32xbf16, #tpu.memory_space<vmem>>, vector<1x512x32xbf16>
    %31 = vector.shape_cast %30 : vector<1x512x32xbf16> to vector<512x32xbf16>
    %c0_28 = arith.constant 0 : index
    %c0_29 = arith.constant 0 : index
    %32 = vector.load %arg9[%c0_28, %c0_29] : memref<16x32xf32, #tpu.memory_space<vmem>>, vector<16x32xf32>
    %cst_30 = arith.constant dense<0.000000e+00> : vector<16x32xf32>
    %33 = tpu.matmul %26, %31, %cst_30 {dimension_numbers = #tpu.dot_dimension_numbers<[1], [0], [0], [1], [0, 0, 1, 1], [], []>} : vector<16x512xbf16>, vector<512x32xbf16>, vector<16x32xf32> -> vector<16x32xf32>
    %34 = arith.addf %32, %33 : vector<16x32xf32>
    %c0_31 = arith.constant 0 : index
    %c0_32 = arith.constant 0 : index
    %35 = vector.load %arg9[%c0_31, %c0_32] : memref<16x32xf32, #tpu.memory_space<vmem>>, vector<16x32xf32>
    tpu.vector_store %arg9[%c0_31, %c0_32], %34 {strides = array<i32>} : memref<16x32xf32, #tpu.memory_space<vmem>>, vector<16x32xf32>,
    %c2_i32_33 = arith.constant 2 : i32
    %36 = arith.cmpi eq, %arg2, %c2_i32_33 : i32
    %37 = arith.extui %36 : i1 to i32
    %c0_i32_34 = arith.constant 0 : i32
    %38 = arith.cmpi ne, %37, %c0_i32_34 : i32
    scf.if %38 {
      %c0_35 = arith.constant 0 : index
      %c0_36 = arith.constant 0 : index
      %39 = vector.load %arg9[%c0_35, %c0_36] : memref<16x32xf32, #tpu.memory_space<vmem>>, vector<16x32xf32>
      %c0_37 = arith.constant 0 : index
      %c0_38 = arith.constant 0 : index
      %40 = vector.load %arg5[%c0_37, %c0_38] : memref<1x32xf32, #tpu.memory_space<vmem>>, vector<1x32xf32>
      %41 = vector.broadcast %40 : vector<1x32xf32> to vector<16x32xf32>
      %42 = arith.addf %39, %41 : vector<16x32xf32>
      %c0_39 = arith.constant 0 : index
      %c0_40 = arith.constant 0 : index
      %43 = memref.load %arg6[%c0_39, %c0_40] : memref<1x1xf32, #tpu.memory_space<smem>>
      %cst_41 = arith.constant 0.000000e+00 : f32
      %44 = vector.broadcast %cst_41 : f32 to vector<16x32xf32>
      %45 = arith.cmpf ogt, %42, %44 : vector<16x32xf32>
      %46 = vector.broadcast %43 : f32 to vector<16x32xf32>
      %47 = arith.mulf %46, %42 : vector<16x32xf32>
      %48 = arith.select %45, %42, %47 : vector<16x32xi1>, vector<16x32xf32>
      %c0_42 = arith.constant 0 : index
      %c0_43 = arith.constant 0 : index
      %c0_44 = arith.constant 0 : index
      %c0_45 = arith.constant 0 : index
      %49 = vector.load %arg7[%c0_42, %c0_43, %c0_44, %c0_45] : memref<1x1x16x32xbf16, #tpu.memory_space<vmem>>, vector<1x1x16x32xbf16>
      %50 = vector.shape_cast %49 : vector<1x1x16x32xbf16> to vector<16x32xbf16>
      %51 = arith.extf %50 : vector<16x32xbf16> to vector<16x32xf32>
      %cst_46 = arith.constant -1.000000e+00 : f32
      %52 = vector.broadcast %cst_46 : f32 to vector<16x32xf32>
      %53 = arith.mulf %52, %51 : vector<16x32xf32>
      %54 = arith.addf %48, %53 : vector<16x32xf32>
      %55 = arith.truncf %54 : vector<16x32xf32> to vector<16x32xbf16>
      %c0_47 = arith.constant 0 : index
      %c0_48 = arith.constant 0 : index
      %c0_49 = arith.constant 0 : index
      %c0_50 = arith.constant 0 : index
      %56 = vector.load %arg8[%c0_47, %c0_48, %c0_49, %c0_50] : memref<1x1x16x32xbf16, #tpu.memory_space<vmem>>, vector<1x1x16x32xbf16>
      %57 = vector.shape_cast %56 : vector<1x1x16x32xbf16> to vector<16x32xbf16>
      %58 = vector.shape_cast %55 : vector<16x32xbf16> to vector<1x1x16x32xbf16>
      tpu.vector_store %arg8[%c0_47, %c0_48, %c0_49, %c0_50], %58 {strides = array<i32>} : memref<1x1x16x32xbf16, #tpu.memory_space<vmem>>, vector<1x1x16x32xbf16>,
    } else {
    }
    return
  }
  func.func @transform_0(%arg0: i32, %arg1: i32, %arg2: i32) -> (i32, i32, i32, i32) {
    %0 = arith.addi %arg1, %arg2 : i32
    %c0_i32 = arith.constant 0 : i32
    %c0_i32_0 = arith.constant 0 : i32
    %c0_i32_1 = arith.constant 0 : i32
    return %arg0, %0, %c0_i32, %c0_i32_0 : i32, i32, i32, i32
  }
  func.func @transform_1(%arg0: i32, %arg1: i32, %arg2: i32) -> (i32, i32, i32) {
    %c0_i32 = arith.constant 0 : i32
    %c0_i32_0 = arith.constant 0 : i32
    %c0_i32_1 = arith.constant 0 : i32
    %c0_i32_2 = arith.constant 0 : i32
    return %c0_i32, %c0_i32_0, %c0_i32_1 : i32, i32, i32
  }
  func.func @transform_2(%arg0: i32, %arg1: i32, %arg2: i32) -> (i32, i32) {
    %c0_i32 = arith.constant 0 : i32
    %c0_i32_0 = arith.constant 0 : i32
    %c0_i32_1 = arith.constant 0 : i32
    return %c0_i32, %c0_i32_0 : i32, i32
  }
  func.func @transform_3(%arg0: i32, %arg1: i32, %arg2: i32) -> (i32, i32) {
    %c0_i32 = arith.constant 0 : i32
    %c0_i32_0 = arith.constant 0 : i32
    %c0_i32_1 = arith.constant 0 : i32
    return %c0_i32, %c0_i32_0 : i32, i32
  }
  func.func @transform_4(%arg0: i32, %arg1: i32, %arg2: i32) -> (i32, i32, i32, i32) {
    %c0_i32 = arith.constant 0 : i32
    %c0_i32_0 = arith.constant 0 : i32
    %c0_i32_1 = arith.constant 0 : i32
    return %arg0, %arg1, %c0_i32, %c0_i32_0 : i32, i32, i32, i32
  }
  func.func @transform_5(%arg0: i32, %arg1: i32, %arg2: i32) -> (i32, i32, i32, i32) {
    %c0_i32 = arith.constant 0 : i32
    %c0_i32_0 = arith.constant 0 : i32
    %c0_i32_1 = arith.constant 0 : i32
    return %arg0, %arg1, %c0_i32, %c0_i32_0 : i32, i32, i32, i32
  }
}

module attributes {stable_mosaic.version = 11 : i64} {
  func.func @_tap_stage_kernel(%arg0: i32, %arg1: i32, %arg2: i32, %arg3: memref<1x1x16x96xbf16, #tpu.memory_space<vmem>>, %arg4: memref<3x96x512xbf16, #tpu.memory_space<vmem>>, %arg5: memref<1x512xf32, #tpu.memory_space<vmem>>, %arg6: memref<1x1xf32, #tpu.memory_space<smem>>, %arg7: memref<1x1x16x512xbf16, #tpu.memory_space<vmem>>, %arg8: memref<1x1x16x512xf32, #tpu.memory_space<vmem>>, %arg9: memref<16x512xf32, #tpu.memory_space<vmem>>) attributes {dimension_semantics = [#tpu.dimension_semantics<parallel>, #tpu.dimension_semantics<parallel>, #tpu.dimension_semantics<arbitrary>], iteration_bounds = array<i64: 2, 16, 3>, scalar_prefetch = 0 : i64, scratch_operands = 1 : i64, tpu.core_type = #tpu.core_type<tc>, window_params = [{transform_indices = @transform_0, window_bounds = array<i64: 1, 1, 16, 96>}, {pipeline_mode = #tpu.pipeline_mode<synchronous>, transform_indices = @transform_1, window_bounds = array<i64: 3, 96, 512>}, {pipeline_mode = #tpu.pipeline_mode<synchronous>, transform_indices = @transform_2, window_bounds = array<i64: 1, 512>}, {transform_indices = @transform_3, window_bounds = array<i64: 1, 1>}, {transform_indices = @transform_4, window_bounds = array<i64: 1, 1, 16, 512>}, {transform_indices = @transform_5, window_bounds = array<i64: 1, 1, 16, 512>}]} {
    %c0_i32 = arith.constant 0 : i32
    %0 = arith.cmpi eq, %arg2, %c0_i32 : i32
    %1 = arith.extui %0 : i1 to i32
    %c0_i32_0 = arith.constant 0 : i32
    %2 = arith.cmpi ne, %1, %c0_i32_0 : i32
    scf.if %2 {
      %cst_12 = arith.constant 0.000000e+00 : f32
      %17 = vector.broadcast %cst_12 : f32 to vector<16x512xf32>
      %c0_13 = arith.constant 0 : index
      %c0_14 = arith.constant 0 : index
      %18 = vector.load %arg9[%c0_13, %c0_14] : memref<16x512xf32, #tpu.memory_space<vmem>>, vector<16x512xf32>
      tpu.vector_store %arg9[%c0_13, %c0_14], %17 {strides = array<i32>} : memref<16x512xf32, #tpu.memory_space<vmem>>, vector<16x512xf32>,
    } else {
    }
    %c0 = arith.constant 0 : index
    %c0_1 = arith.constant 0 : index
    %c0_2 = arith.constant 0 : index
    %c0_3 = arith.constant 0 : index
    %3 = vector.load %arg3[%c0, %c0_1, %c0_2, %c0_3] : memref<1x1x16x96xbf16, #tpu.memory_space<vmem>>, vector<1x1x16x96xbf16>
    %4 = vector.shape_cast %3 : vector<1x1x16x96xbf16> to vector<16x96xbf16>
    %c1_i32 = arith.constant 1 : i32
    %5 = arith.muli %arg2, %c1_i32 : i32
    %c0_i32_4 = arith.constant 0 : i32
    %6 = arith.addi %5, %c0_i32_4 : i32
    %7 = arith.index_cast %6 : i32 to index
    %c0_5 = arith.constant 0 : index
    %c0_6 = arith.constant 0 : index
    %8 = vector.load %arg4[%7, %c0_5, %c0_6] : memref<3x96x512xbf16, #tpu.memory_space<vmem>>, vector<1x96x512xbf16>
    %9 = vector.shape_cast %8 : vector<1x96x512xbf16> to vector<96x512xbf16>
    %c0_7 = arith.constant 0 : index
    %c0_8 = arith.constant 0 : index
    %10 = vector.load %arg9[%c0_7, %c0_8] : memref<16x512xf32, #tpu.memory_space<vmem>>, vector<16x512xf32>
    %cst = arith.constant dense<0.000000e+00> : vector<16x512xf32>
    %11 = tpu.matmul %4, %9, %cst {dimension_numbers = #tpu.dot_dimension_numbers<[1], [0], [0], [1], [0, 0, 1, 1], [], []>} : vector<16x96xbf16>, vector<96x512xbf16>, vector<16x512xf32> -> vector<16x512xf32>
    %12 = arith.addf %10, %11 : vector<16x512xf32>
    %c0_9 = arith.constant 0 : index
    %c0_10 = arith.constant 0 : index
    %13 = vector.load %arg9[%c0_9, %c0_10] : memref<16x512xf32, #tpu.memory_space<vmem>>, vector<16x512xf32>
    tpu.vector_store %arg9[%c0_9, %c0_10], %12 {strides = array<i32>} : memref<16x512xf32, #tpu.memory_space<vmem>>, vector<16x512xf32>,
    %c2_i32 = arith.constant 2 : i32
    %14 = arith.cmpi eq, %arg2, %c2_i32 : i32
    %15 = arith.extui %14 : i1 to i32
    %c0_i32_11 = arith.constant 0 : i32
    %16 = arith.cmpi ne, %15, %c0_i32_11 : i32
    scf.if %16 {
      %c0_12 = arith.constant 0 : index
      %c0_13 = arith.constant 0 : index
      %17 = vector.load %arg9[%c0_12, %c0_13] : memref<16x512xf32, #tpu.memory_space<vmem>>, vector<16x512xf32>
      %c0_14 = arith.constant 0 : index
      %c0_15 = arith.constant 0 : index
      %18 = vector.load %arg5[%c0_14, %c0_15] : memref<1x512xf32, #tpu.memory_space<vmem>>, vector<1x512xf32>
      %19 = vector.broadcast %18 : vector<1x512xf32> to vector<16x512xf32>
      %20 = arith.addf %17, %19 : vector<16x512xf32>
      %c0_16 = arith.constant 0 : index
      %c0_17 = arith.constant 0 : index
      %21 = memref.load %arg6[%c0_16, %c0_17] : memref<1x1xf32, #tpu.memory_space<smem>>
      %cst_18 = arith.constant 0.000000e+00 : f32
      %22 = vector.broadcast %cst_18 : f32 to vector<16x512xf32>
      %23 = arith.cmpf ogt, %20, %22 : vector<16x512xf32>
      %24 = vector.broadcast %21 : f32 to vector<16x512xf32>
      %25 = arith.mulf %24, %20 : vector<16x512xf32>
      %26 = arith.select %23, %20, %25 : vector<16x512xi1>, vector<16x512xf32>
      %c0_19 = arith.constant 0 : index
      %c0_20 = arith.constant 0 : index
      %c0_21 = arith.constant 0 : index
      %c0_22 = arith.constant 0 : index
      %27 = vector.load %arg7[%c0_19, %c0_20, %c0_21, %c0_22] : memref<1x1x16x512xbf16, #tpu.memory_space<vmem>>, vector<1x1x16x512xbf16>
      %28 = vector.shape_cast %27 : vector<1x1x16x512xbf16> to vector<16x512xbf16>
      %29 = arith.extf %28 : vector<16x512xbf16> to vector<16x512xf32>
      %cst_23 = arith.constant 1.000000e+00 : f32
      %30 = vector.broadcast %cst_23 : f32 to vector<16x512xf32>
      %31 = arith.mulf %30, %29 : vector<16x512xf32>
      %32 = arith.addf %26, %31 : vector<16x512xf32>
      %c0_24 = arith.constant 0 : index
      %c0_25 = arith.constant 0 : index
      %c0_26 = arith.constant 0 : index
      %c0_27 = arith.constant 0 : index
      %33 = vector.load %arg8[%c0_24, %c0_25, %c0_26, %c0_27] : memref<1x1x16x512xf32, #tpu.memory_space<vmem>>, vector<1x1x16x512xf32>
      %34 = vector.shape_cast %33 : vector<1x1x16x512xf32> to vector<16x512xf32>
      %35 = vector.shape_cast %32 : vector<16x512xf32> to vector<1x1x16x512xf32>
      tpu.vector_store %arg8[%c0_24, %c0_25, %c0_26, %c0_27], %35 {strides = array<i32>} : memref<1x1x16x512xf32, #tpu.memory_space<vmem>>, vector<1x1x16x512xf32>,
    } else {
    }
    return
  }
  func.func @transform_0(%arg0: i32, %arg1: i32, %arg2: i32) -> (i32, i32, i32, i32) {
    %0 = arith.addi %arg1, %arg2 : i32
    %c0_i32 = arith.constant 0 : i32
    %c0_i32_0 = arith.constant 0 : i32
    %c0_i32_1 = arith.constant 0 : i32
    return %arg0, %0, %c0_i32, %c0_i32_0 : i32, i32, i32, i32
  }
  func.func @transform_1(%arg0: i32, %arg1: i32, %arg2: i32) -> (i32, i32, i32) {
    %c0_i32 = arith.constant 0 : i32
    %c0_i32_0 = arith.constant 0 : i32
    %c0_i32_1 = arith.constant 0 : i32
    %c0_i32_2 = arith.constant 0 : i32
    return %c0_i32, %c0_i32_0, %c0_i32_1 : i32, i32, i32
  }
  func.func @transform_2(%arg0: i32, %arg1: i32, %arg2: i32) -> (i32, i32) {
    %c0_i32 = arith.constant 0 : i32
    %c0_i32_0 = arith.constant 0 : i32
    %c0_i32_1 = arith.constant 0 : i32
    return %c0_i32, %c0_i32_0 : i32, i32
  }
  func.func @transform_3(%arg0: i32, %arg1: i32, %arg2: i32) -> (i32, i32) {
    %c0_i32 = arith.constant 0 : i32
    %c0_i32_0 = arith.constant 0 : i32
    %c0_i32_1 = arith.constant 0 : i32
    return %c0_i32, %c0_i32_0 : i32, i32
  }
  func.func @transform_4(%arg0: i32, %arg1: i32, %arg2: i32) -> (i32, i32, i32, i32) {
    %c0_i32 = arith.constant 0 : i32
    %c0_i32_0 = arith.constant 0 : i32
    %c0_i32_1 = arith.constant 0 : i32
    return %arg0, %arg1, %c0_i32, %c0_i32_0 : i32, i32, i32, i32
  }
  func.func @transform_5(%arg0: i32, %arg1: i32, %arg2: i32) -> (i32, i32, i32, i32) {
    %c0_i32 = arith.constant 0 : i32
    %c0_i32_0 = arith.constant 0 : i32
    %c0_i32_1 = arith.constant 0 : i32
    return %arg0, %arg1, %c0_i32, %c0_i32_0 : i32, i32, i32, i32
  }
}

</mosaic_0001>

<bundles_post_ra>
// kernel: d_upblock_forward.4
= control target key start
LH: loop header
LB: loop body
LE: loop exit
PB: predicated region body
PF: predicated region fallthrough
CT: control target
= control target key end

     0   :  { %10 = vsyncpa [#allocation4], 0  ;;  %s1495_s0 = inlined_call_operand.vmem [shape: bf16[256,256], index: 0, kind: input, shape index: {}]   ;;  %s1496_s1 = inlined_call_operand.hbm [shape: bf16[256,128], index: 1, kind: input, shape index: {}]   ;;  %s1497_s2 = inlined_call_operand.hbm [shape: f32[1,128], index: 2, kind: input, shape index: {}]   ;;  %s1498_s3 = inlined_call_operand.<no memory space> [shape: f32[1,1], index: 3, kind: input, shape index: {}]   ;;  %s1499_s4 = inlined_call_operand.vmem [shape: bf16[256,128], index: 4, kind: output, shape index: {}]  }
   0x1   :  { %11 = vsyncpa [#allocation6], 0  ;;  %s1245_s15 = smov [#allocation3]  }
   0x2   :  { %s19_s16 = sshll.u32 %s1245_s15, 4  ;;  %s20_s16 = int_to_ptr.vmem [resolvable:$true] %s19_s16 }
   0x3   :  { %s1209_s17 = scalar_lea.vmem %s20_s16, 2048  ;;  %p1214_p1 = scmp.lt.s32.totalorder %s20_s16, %s20_s16 }
   0x4   :  { %p1210_p0 = scmp.ne.s32.totalorder %s20_s16, %s1209_s17  ;;  %p1215_p2 = scmp.lt.s32.totalorder %s1209_s17, %s1209_s17 }
   0x6   :  { %p1216_p3 = por %p1215_p2, %p1214_p1 }
   0x8   :  { %p1217_p4 = pnand %p1216_p3, %p1210_p0 }
   0xa   :  { %1220 = shalt.err (!%p1217_p4)
}
   0xb   :  { %s1246_s18 = smov 64   ;;  %s1247_s19 = smov 4  }
   0xc   :  { %25 = dma.hbm_to_vmem [thread:$0]  %s1496_s1, 2048, %s20_s16, [#allocation4], %s1246_s18, %s1246_s18, %s1247_s19  }
   0xd   :  { %s1248_s22 = smov [#allocation5]  }
   0xe   :  { %s32_s23 = sshll.u32 %s1248_s22, 4  ;;  %s33_s23 = int_to_ptr.vmem [resolvable:$true] %s32_s23 }
   0xf   :  { %s1229_s24 = scalar_lea.vmem %s33_s23, 16  ;;  %s1233_s25 = scalar_lea.vmem %s33_s23, 32 }
  0x10   :  { %p1230_p5 = scmp.ne.s32.totalorder %s33_s23, %s1229_s24  ;;  %p1234_p6 = scmp.lt.s32.totalorder %s33_s23, %s33_s23 }
  0x11   :  { %p1235_p7 = scmp.lt.s32.totalorder %s1233_s25, %s1229_s24 }
  0x13   :  { %p1236_p8 = por %p1235_p7, %p1234_p6 }
  0x15   :  { %p1237_p9 = pnand %p1236_p8, %p1230_p5 }
  0x17   :  { %1240 = shalt.err (!%p1237_p9)
}
  0x18   :  { %35 = dma.hbm_to_vmem [thread:$0]  %s1497_s2, 16, %s33_s23, [#allocation6]  }
  0x19   :  { %1241 = dma.done.wait [#allocation4], 2048  }
  0x1a   :  { %1242 = vsyncadd [#allocation4], 4294965248 }
  0x1b   :  { %1243 = dma.done.wait [#allocation6], 16  }
  0x1c   :  { %1244 = vsyncadd [#allocation6], 4294967280  ;;  %v1137_v0 = vld [vmem:[#allocation3 + $0x78] sm:$0xff]   ;;  %v1139_v2 = vld [vmem:[#allocation3 + $0x70] sm:$0xff]   ;;  %v1383_v59 = vstv %s1498_s3 }
  0x1d   :  { %v1138_v1 = vld [vmem:[#allocation3 + $0x38] sm:$0xff]   ;;  %1005 = vmatprep.subr.bf16.mxu0 %v1137_v0  ;;  %1117 = vmatprep.subr.bf16.mxu1 %v1137_v0  ;;  %v1140_v3 = vld [vmem:[#allocation3 + $0x30] sm:$0xff]   ;;  %v1141_v4 = vld [vmem:[#allocation3 + $0x68] sm:$0xff]  }
  0x1e   :  { %1006 = vmatpush3.bf16.msra.mxu0 %v1138_v1  ;;  %1125 = vmatpush3.bf16.msra.mxu1 %v1138_v1  ;;  %v1142_v5 = vld [vmem:[#allocation3 + $0x28] sm:$0xff]   ;;  %v1143_v6 = vld [vmem:[#allocation3 + $0x60] sm:$0xff]   ;;  %v1145_v8 = vld [vmem:[#allocation3 + $0x58] sm:$0xff]  }
  0x1f   :  { %1007 = vmatprep.subr.bf16.mxu0 %v1139_v2  ;;  %1118 = vmatprep.subr.bf16.mxu1 %v1139_v2  ;;  %v1144_v7 = vld [vmem:[#allocation3 + $0x20] sm:$0xff]   ;;  %v1146_v9 = vld [vmem:[#allocation3 + $0x18] sm:$0xff]   ;;  %v1147_v10 = vld [vmem:[#allocation3 + $0x50] sm:$0xff]  }
  0x20   :  { %v1155_v11 = vld [vmem:[%s1495_s0 + $0x4] ss:$8 sps:$4 sm:$0xff]   ;;  %v1148_v13 = vld [vmem:[#allocation3 + $0x10] sm:$0xff]   ;;  %v1153_v18 = vld [vmem:[%s1495_s0] ss:$8 sps:$4 sm:$0xff]  }
  0x21   :  { %v1158_v12 = vld [vmem:[%s1495_s0 + $0x84] ss:$8 sps:$4 sm:$0xff]   ;;  %404 = vmatprep.mubr.bf16.mxu0 %v1155_v11  ;;  %v1156_v19 = vld [vmem:[%s1495_s0 + $0x80] ss:$8 sps:$4 sm:$0xff]   ;;  %v1159_v20 = vld [vmem:[%s1495_s0 + $0x14] ss:$8 sps:$4 sm:$0xff]  }
  0x22   :  { %1008 = vmatpush3.bf16.msra.mxu0 %v1140_v3  ;;  %1126 = vmatpush3.bf16.msra.mxu1 %v1140_v3  ;;  %v1149_v14 = vld [vmem:[#allocation3 + $0x48] sm:$0xff]   ;;  %v1151_v16 = vld [vmem:[#allocation3 + $0x40] sm:$0xff]   ;;  %v1161_v21 = vld [vmem:[%s1495_s0 + $0x94] ss:$8 sps:$4 sm:$0xff]  }
  0x23   :  { %1009 = vmatprep.subr.bf16.mxu0 %v1141_v4  ;;  %1119 = vmatprep.subr.bf16.mxu1 %v1141_v4  ;;  %v1150_v15 = vld [vmem:[#allocation3 + $0x8] sm:$0xff]   ;;  %v1152_v17 = vld [vmem:[#allocation3] sm:$0xff]   ;;  %v1163_v22 = vld [vmem:[%s1495_s0 + $0x10] ss:$8 sps:$4 sm:$0xff]  }
  0x24   :  { %468 = vmatprep.mubr.bf16.mxu1 %v1158_v12  ;;  %v1164_v23 = vld [vmem:[%s1495_s0 + $0x90] ss:$8 sps:$4 sm:$0xff]   ;;  %v1165_v24 = vld [vmem:[%s1495_s0 + $0x24] ss:$8 sps:$4 sm:$0xff]   ;;  %v1169_v26 = vld [vmem:[%s1495_s0 + $0x20] ss:$8 sps:$4 sm:$0xff]  }
  0x25   :  { %v1167_v25 = vld [vmem:[%s1495_s0 + $0xa4] ss:$8 sps:$4 sm:$0xff]   ;;  %v1170_v27 = vld [vmem:[%s1495_s0 + $0xa0] ss:$8 sps:$4 sm:$0xff]   ;;  %v1171_v28 = vld [vmem:[%s1495_s0 + $0x34] ss:$8 sps:$4 sm:$0xff]  }
  0x26   :  { %1010 = vmatpush3.bf16.msra.mxu0 %v1142_v5  ;;  %1127 = vmatpush3.bf16.msra.mxu1 %v1142_v5  ;;  %v1173_v29 = vld [vmem:[%s1495_s0 + $0xb4] ss:$8 sps:$4 sm:$0xff]   ;;  %v1175_v30 = vld [vmem:[%s1495_s0 + $0x30] ss:$8 sps:$4 sm:$0xff]   ;;  %v1177_v32 = vld [vmem:[%s1495_s0 + $0x44] ss:$8 sps:$4 sm:$0xff]  }
  0x27   :  { %1011 = vmatprep.subr.bf16.mxu0 %v1143_v6  ;;  %1120 = vmatprep.subr.bf16.mxu1 %v1143_v6  ;;  %v1176_v31 = vld [vmem:[%s1495_s0 + $0xb0] ss:$8 sps:$4 sm:$0xff]   ;;  %v1179_v33 = vld [vmem:[%s1495_s0 + $0xc4] ss:$8 sps:$4 sm:$0xff]   ;;  %v1181_v34 = vld [vmem:[%s1495_s0 + $0x40] ss:$8 sps:$4 sm:$0xff]  }
  0x28   :  { %v1182_v35 = vld [vmem:[%s1495_s0 + $0xc0] ss:$8 sps:$4 sm:$0xff]   ;;  %v1183_v36 = vld [vmem:[%s1495_s0 + $0x54] ss:$8 sps:$4 sm:$0xff]   ;;  %v1187_v38 = vld [vmem:[%s1495_s0 + $0x50] ss:$8 sps:$4 sm:$0xff]  }
  0x29   :  { %v1185_v37 = vld [vmem:[%s1495_s0 + $0xd4] ss:$8 sps:$4 sm:$0xff]   ;;  %v1188_v39 = vld [vmem:[%s1495_s0 + $0xd0] ss:$8 sps:$4 sm:$0xff]   ;;  %v1189_v40 = vld [vmem:[%s1495_s0 + $0x64] ss:$8 sps:$4 sm:$0xff]  }
  0x2a   :  { %1012 = vmatpush3.bf16.msra.mxu0 %v1144_v7  ;;  %1128 = vmatpush3.bf16.msra.mxu1 %v1144_v7  ;;  %v1191_v41 = vld [vmem:[%s1495_s0 + $0xe4] ss:$8 sps:$4 sm:$0xff]   ;;  %v1193_v42 = vld [vmem:[%s1495_s0 + $0x60] ss:$8 sps:$4 sm:$0xff]   ;;  %v1195_v44 = vld [vmem:[%s1495_s0 + $0x74] ss:$8 sps:$4 sm:$0xff]  }
  0x2b   :  { %1013 = vmatprep.subr.bf16.mxu0 %v1145_v8  ;;  %1121 = vmatprep.subr.bf16.mxu1 %v1145_v8  ;;  %v1194_v43 = vld [vmem:[%s1495_s0 + $0xe0] ss:$8 sps:$4 sm:$0xff]   ;;  %v1197_v45 = vld [vmem:[%s1495_s0 + $0xf4] ss:$8 sps:$4 sm:$0xff]   ;;  %v1199_v46 = vld [vmem:[%s1495_s0 + $0x70] ss:$8 sps:$4 sm:$0xff]  }
  0x2c   :  { %v1200_v47 = vld [vmem:[%s1495_s0 + $0xf0] ss:$8 sps:$4 sm:$0xff]   ;;  %v1376_v50 = vld [vmem:[#allocation5] ss:$0 sm:$0xff] }
  0x2e   :  { %1014 = vmatpush3.bf16.msra.mxu0 %v1146_v9  ;;  %1129 = vmatpush3.bf16.msra.mxu1 %v1146_v9 }
  0x2f   :  { %1015 = vmatprep.subr.bf16.mxu0 %v1147_v10  ;;  %1122 = vmatprep.subr.bf16.mxu1 %v1147_v10 }
  0x32   :  { %1016 = vmatpush3.bf16.msra.mxu0 %v1148_v13  ;;  %1130 = vmatpush3.bf16.msra.mxu1 %v1148_v13 }
  0x33   :  { %1017 = vmatprep.subr.bf16.mxu0 %v1149_v14  ;;  %1123 = vmatprep.subr.bf16.mxu1 %v1149_v14 }
  0x36   :  { %1018 = vmatpush3.bf16.msra.mxu0 %v1150_v15  ;;  %1131 = vmatpush3.bf16.msra.mxu1 %v1150_v15 }
  0x37   :  { %1019 = vmatprep.subr.bf16.mxu0 %v1151_v16  ;;  %1124 = vmatprep.subr.bf16.mxu1 %v1151_v16 }
  0x3a   :  { %1020 = vmatpush3.bf16.msra.mxu0 %v1152_v17  ;;  %1132 = vmatpush3.bf16.msra.mxu1 %v1152_v17 }
  0x3d   :  { %405 = vmatmul.mubr.bf16.vlgmr.msra.gmra.mxu0 %v1153_v18  ;;  %469 = vmatmul.mubr.bf16.vlgmr.msra.gmra.mxu1 %v1156_v19 }
  0x3e   :  { %412 = vmatprep.mubr.bf16.mxu0 %v1159_v20  ;;  %476 = vmatprep.mubr.bf16.mxu1 %v1161_v21 }
  0x45   :  { %413 = vmatmul.mubr.bf16.gmra.mxu0 %v1163_v22  ;;  %477 = vmatmul.mubr.bf16.gmra.mxu1 %v1164_v23 }
  0x46   :  { %420 = vmatprep.mubr.bf16.mxu0 %v1165_v24  ;;  %484 = vmatprep.mubr.bf16.mxu1 %v1167_v25 }
  0x4d   :  { %421 = vmatmul.mubr.bf16.gmra.mxu0 %v1169_v26  ;;  %485 = vmatmul.mubr.bf16.gmra.mxu1 %v1170_v27 }
  0x4e   :  { %428 = vmatprep.mubr.bf16.mxu0 %v1171_v28  ;;  %492 = vmatprep.mubr.bf16.mxu1 %v1173_v29 }
  0x55   :  { %429 = vmatmul.mubr.bf16.gmra.mxu0 %v1175_v30  ;;  %493 = vmatmul.mubr.bf16.gmra.mxu1 %v1176_v31 }
  0x56   :  { %436 = vmatprep.mubr.bf16.mxu0 %v1177_v32  ;;  %500 = vmatprep.mubr.bf16.mxu1 %v1179_v33 }
  0x5d   :  { %437 = vmatmul.mubr.bf16.gmra.mxu0 %v1181_v34  ;;  %501 = vmatmul.mubr.bf16.gmra.mxu1 %v1182_v35 }
  0x5e   :  { %444 = vmatprep.mubr.bf16.mxu0 %v1183_v36  ;;  %508 = vmatprep.mubr.bf16.mxu1 %v1185_v37 }
  0x65   :  { %445 = vmatmul.mubr.bf16.gmra.mxu0 %v1187_v38  ;;  %509 = vmatmul.mubr.bf16.gmra.mxu1 %v1188_v39 }
  0x66   :  { %452 = vmatprep.mubr.bf16.mxu0 %v1189_v40  ;;  %516 = vmatprep.mubr.bf16.mxu1 %v1191_v41 }
  0x6d   :  { %453 = vmatmul.mubr.bf16.gmra.mxu0 %v1193_v42  ;;  %517 = vmatmul.mubr.bf16.gmra.mxu1 %v1194_v43 }
  0x6e   :  { %460 = vmatprep.mubr.bf16.mxu0 %v1195_v44  ;;  %524 = vmatprep.mubr.bf16.mxu1 %v1197_v45 }
  0x75   :  { %461 = vmatmul.mubr.bf16.gmra.mxu0 %v1199_v46  ;;  %525 = vmatmul.mubr.bf16.gmra.mxu1 %v1200_v47 }
  0xfd   :  { %v1021_v48 = vpop.f32.mrf.mxu0  ;;  %v1069_v49 = vpop.f32.mrf.mxu1 }
  0xff   :  { %v1022_v51 = vpop.f32.mrf.mxu0  ;;  %v1070_v52 = vpop.f32.mrf.mxu1 }
 0x100   :  { %v1023_v53 = vadd.f32 %v1022_v51, %v1021_v48  ;;  %v1071_v54 = vadd.f32 %v1070_v52, %v1069_v49 }
 0x101   :  { %v1024_v55 = vpop.f32.mrf.mxu0  ;;  %v1072_v56 = vpop.f32.mrf.mxu1 }
 0x102   :  { %v407_v57 = vadd.f32 %v1023_v53, %v1376_v50  ;;  %v471_v58 = vadd.f32 %v1071_v54, %v1376_v50 }
 0x103   :  { %v1025_v60 = vpop.f32.mrf.mxu0  ;;  %v1073_v61 = vpop.f32.mrf.mxu1 }
 0x104   :  { %v1026_v62 = vadd.f32 %v1025_v60, %v1024_v55  ;;  %v1074_v63 = vadd.f32 %v1073_v61, %v1072_v56  ;;  %v567_v2 = vmul.f32 %v1383_v59, %v407_v57  ;;  %v583_v3 = vmul.f32 %v1383_v59, %v471_v58 }
 0x105   :  { %v1027_v0 = vpop.f32.mrf.mxu0  ;;  %v1075_v1 = vpop.f32.mrf.mxu1  ;;  %vm534_vm0 = vcmp.gt.f32.partialorder %v407_v57, 0.0  ;;  %vm550_vm1 = vcmp.gt.f32.partialorder %v471_v58, 0.0 }
 0x106   :  { %v410_v4 = vadd.f32 %v1026_v62, %v1376_v50  ;;  %v474_v5 = vadd.f32 %v1074_v63, %v1376_v50  ;;  %v599_v14 = vsel %vm534_vm0, %v407_v57, %v567_v2  ;;  %v615_v15 = vsel %vm550_vm1, %v471_v58, %v583_v3 }
 0x107   :  { %v1028_v6 = vpop.f32.mrf.mxu0  ;;  %v1076_v7 = vpop.f32.mrf.mxu1 }
 0x108   :  { %v1029_v8 = vadd.f32 %v1028_v6, %v1027_v0  ;;  %v1077_v9 = vadd.f32 %v1076_v7, %v1075_v1  ;;  %vm535_vm2 = vcmp.gt.f32.partialorder %v410_v4, 0.0  ;;  %v568_v10 = vmul.f32 %v1383_v59, %v410_v4 }
 0x109   :  { %vm551_vm3 = vcmp.gt.f32.partialorder %v474_v5, 0.0  ;;  %v584_v11 = vmul.f32 %v1383_v59, %v474_v5  ;;  %v1030_v12 = vpop.f32.mrf.mxu0  ;;  %v1078_v13 = vpop.f32.mrf.mxu1 }
 0x10a   :  { %v600_v16 = vsel %vm535_vm2, %v410_v4, %v568_v10  ;;  %v415_v18 = vadd.f32 %v1029_v8, %v1376_v50  ;;  %v479_v19 = vadd.f32 %v1077_v9, %v1376_v50 }
 0x10b   :  { %v616_v17 = vsel %vm551_vm3, %v474_v5, %v584_v11  ;;  %v1031_v20 = vpop.f32.mrf.mxu0  ;;  %v1079_v21 = vpop.f32.mrf.mxu1  ;;  %v913_v22 = vpack.c.bf16 %v600_v16, %v599_v14 }
 0x10c   :  { %v953_v23 = vpack.c.bf16 %v616_v17, %v615_v15  ;;  %v1032_v24 = vadd.f32 %v1031_v20, %v1030_v12  ;;  %v1080_v25 = vadd.f32 %v1079_v21, %v1078_v13  ;;  %v569_v28 = vmul.f32 %v1383_v59, %v415_v18 }
 0x10d   :  { %v1033_v26 = vpop.f32.mrf.mxu0  ;;  %v1081_v27 = vpop.f32.mrf.mxu1  ;;  %914 = vst [vmem:[%s1499_s4] sm:$0xff] %v913_v22   ;;  %v585_v29 = vmul.f32 %v1383_v59, %v479_v19  ;;  %vm536_vm4 = vcmp.gt.f32.partialorder %v415_v18, 0.0  ;;  %vm552_vm5 = vcmp.gt.f32.partialorder %v479_v19, 0.0 }
 0x10e   :  { %997 = vst [vmem:[%s1499_s4 + $0x40] sm:$0xff] %v953_v23   ;;  %v418_v30 = vadd.f32 %v1032_v24, %v1376_v50  ;;  %v482_v31 = vadd.f32 %v1080_v25, %v1376_v50  ;;  %v601_v42 = vsel %vm536_vm4, %v415_v18, %v569_v28 }
 0x10f   :  { %v1034_v32 = vpop.f32.mrf.mxu0  ;;  %v1082_v33 = vpop.f32.mrf.mxu1  ;;  %v617_v43 = vsel %vm552_vm5, %v479_v19, %v585_v29 }
 0x110   :  { %v1035_v34 = vadd.f32 %v1034_v32, %v1033_v26  ;;  %v1083_v35 = vadd.f32 %v1082_v33, %v1081_v27  ;;  %vm537_vm6 = vcmp.gt.f32.partialorder %v418_v30, 0.0  ;;  %v570_v36 = vmul.f32 %v1383_v59, %v418_v30 }
 0x111   :  { %vm553_vm7 = vcmp.gt.f32.partialorder %v482_v31, 0.0  ;;  %v586_v37 = vmul.f32 %v1383_v59, %v482_v31  ;;  %v1036_v38 = vpop.f32.mrf.mxu0  ;;  %v1084_v39 = vpop.f32.mrf.mxu1 }
 0x112   :  { %v423_v40 = vadd.f32 %v1035_v34, %v1376_v50  ;;  %v487_v41 = vadd.f32 %v1083_v35, %v1376_v50  ;;  %v602_v44 = vsel %vm537_vm6, %v418_v30, %v570_v36 }
 0x113   :  { %v618_v45 = vsel %vm553_vm7, %v482_v31, %v586_v37  ;;  %v1037_v46 = vpop.f32.mrf.mxu0  ;;  %v1085_v47 = vpop.f32.mrf.mxu1  ;;  %v918_v48 = vpack.c.bf16 %v602_v44, %v601_v42 }
 0x114   :  { %v958_v49 = vpack.c.bf16 %v618_v45, %v617_v43  ;;  %v1038_v51 = vadd.f32 %v1037_v46, %v1036_v38  ;;  %v1086_v52 = vadd.f32 %v1085_v47, %v1084_v39  ;;  %v571_v55 = vmul.f32 %v1383_v59, %v423_v40 }
 0x115   :  { %v1039_v53 = vpop.f32.mrf.mxu0  ;;  %v1087_v54 = vpop.f32.mrf.mxu1  ;;  %990 = vst [vmem:[%s1499_s4 + $0x8] sm:$0xff] %v918_v48   ;;  %v587_v56 = vmul.f32 %v1383_v59, %v487_v41  ;;  %vm538_vm8 = vcmp.gt.f32.partialorder %v423_v40, 0.0  ;;  %vm554_vm9 = vcmp.gt.f32.partialorder %v487_v41, 0.0 }
 0x116   :  { %998 = vst [vmem:[%s1499_s4 + $0x48] sm:$0xff] %v958_v49   ;;  %v426_v57 = vadd.f32 %v1038_v51, %v1376_v50  ;;  %v490_v58 = vadd.f32 %v1086_v52, %v1376_v50  ;;  %v603_v4 = vsel %vm538_vm8, %v423_v40, %v571_v55 }
 0x117   :  { %v1040_v60 = vpop.f32.mrf.mxu0  ;;  %v1088_v61 = vpop.f32.mrf.mxu1  ;;  %v619_v5 = vsel %vm554_vm9, %v487_v41, %v587_v56 }
 0x118   :  { %v1041_v62 = vadd.f32 %v1040_v60, %v1039_v53  ;;  %v1089_v63 = vadd.f32 %v1088_v61, %v1087_v54  ;;  %vm539_vm10 = vcmp.gt.f32.partialorder %v426_v57, 0.0  ;;  %v572_v0 = vmul.f32 %v1383_v59, %v426_v57 }
 0x119   :  { %vm555_vm11 = vcmp.gt.f32.partialorder %v490_v58, 0.0  ;;  %v588_v1 = vmul.f32 %v1383_v59, %v490_v58  ;;  %v1042_v2 = vpop.f32.mrf.mxu0  ;;  %v1090_v3 = vpop.f32.mrf.mxu1 }
 0x11a   :  { %v604_v6 = vsel %vm539_vm10, %v426_v57, %v572_v0  ;;  %v431_v8 = vadd.f32 %v1041_v62, %v1376_v50  ;;  %v495_v9 = vadd.f32 %v1089_v63, %v1376_v50 }
 0x11b   :  { %v620_v7 = vsel %vm555_vm11, %v490_v58, %v588_v1  ;;  %v1043_v10 = vpop.f32.mrf.mxu0  ;;  %v1091_v11 = vpop.f32.mrf.mxu1  ;;  %v923_v12 = vpack.c.bf16 %v604_v6, %v603_v4 }
 0x11c   :  { %v963_v13 = vpack.c.bf16 %v620_v7, %v619_v5  ;;  %v1044_v14 = vadd.f32 %v1043_v10, %v1042_v2  ;;  %v1092_v15 = vadd.f32 %v1091_v11, %v1090_v3  ;;  %v573_v18 = vmul.f32 %v1383_v59, %v431_v8 }
 0x11d   :  { %v1045_v16 = vpop.f32.mrf.mxu0  ;;  %v1093_v17 = vpop.f32.mrf.mxu1  ;;  %991 = vst [vmem:[%s1499_s4 + $0x10] sm:$0xff] %v923_v12   ;;  %v589_v19 = vmul.f32 %v1383_v59, %v495_v9  ;;  %vm540_vm12 = vcmp.gt.f32.partialorder %v431_v8, 0.0  ;;  %vm556_vm13 = vcmp.gt.f32.partialorder %v495_v9, 0.0 }
 0x11e   :  { %999 = vst [vmem:[%s1499_s4 + $0x50] sm:$0xff] %v963_v13   ;;  %v434_v20 = vadd.f32 %v1044_v14, %v1376_v50  ;;  %v498_v21 = vadd.f32 %v1092_v15, %v1376_v50  ;;  %v605_v32 = vsel %vm540_vm12, %v431_v8, %v573_v18 }
 0x11f   :  { %v1046_v22 = vpop.f32.mrf.mxu0  ;;  %v1094_v23 = vpop.f32.mrf.mxu1  ;;  %v621_v33 = vsel %vm556_vm13, %v495_v9, %v589_v19 }
 0x120   :  { %v1047_v24 = vadd.f32 %v1046_v22, %v1045_v16  ;;  %v1095_v25 = vadd.f32 %v1094_v23, %v1093_v17  ;;  %vm541_vm14 = vcmp.gt.f32.partialorder %v434_v20, 0.0  ;;  %v574_v26 = vmul.f32 %v1383_v59, %v434_v20 }
 0x121   :  { %vm557_vm15 = vcmp.gt.f32.partialorder %v498_v21, 0.0  ;;  %v590_v27 = vmul.f32 %v1383_v59, %v498_v21  ;;  %v1048_v28 = vpop.f32.mrf.mxu0  ;;  %v1096_v29 = vpop.f32.mrf.mxu1 }
 0x122   :  { %v439_v30 = vadd.f32 %v1047_v24, %v1376_v50  ;;  %v503_v31 = vadd.f32 %v1095_v25, %v1376_v50  ;;  %v606_v34 = vsel %vm541_vm14, %v434_v20, %v574_v26 }
 0x123   :  { %v622_v35 = vsel %vm557_vm15, %v498_v21, %v590_v27  ;;  %v1049_v36 = vpop.f32.mrf.mxu0  ;;  %v1097_v37 = vpop.f32.mrf.mxu1  ;;  %v928_v38 = vpack.c.bf16 %v606_v34, %v605_v32 }
 0x124   :  { %v968_v39 = vpack.c.bf16 %v622_v35, %v621_v33  ;;  %v1050_v40 = vadd.f32 %v1049_v36, %v1048_v28  ;;  %v1098_v41 = vadd.f32 %v1097_v37, %v1096_v29  ;;  %v575_v44 = vmul.f32 %v1383_v59, %v439_v30 }
 0x125   :  { %v1051_v42 = vpop.f32.mrf.mxu0  ;;  %v1099_v43 = vpop.f32.mrf.mxu1  ;;  %992 = vst [vmem:[%s1499_s4 + $0x18] sm:$0xff] %v928_v38   ;;  %v591_v45 = vmul.f32 %v1383_v59, %v503_v31  ;;  %vm542_vm0 = vcmp.gt.f32.partialorder %v439_v30, 0.0  ;;  %vm558_vm1 = vcmp.gt.f32.partialorder %v503_v31, 0.0 }
 0x126   :  { %1000 = vst [vmem:[%s1499_s4 + $0x58] sm:$0xff] %v968_v39   ;;  %v442_v46 = vadd.f32 %v1050_v40, %v1376_v50  ;;  %v506_v47 = vadd.f32 %v1098_v41, %v1376_v50  ;;  %v607_v57 = vsel %vm542_vm0, %v439_v30, %v575_v44 }
 0x127   :  { %v1052_v48 = vpop.f32.mrf.mxu0  ;;  %v1100_v49 = vpop.f32.mrf.mxu1  ;;  %v623_v58 = vsel %vm558_vm1, %v503_v31, %v591_v45 }
 0x128   :  { %v1053_v51 = vadd.f32 %v1052_v48, %v1051_v42  ;;  %v1101_v52 = vadd.f32 %v1100_v49, %v1099_v43  ;;  %vm543_vm2 = vcmp.gt.f32.partialorder %v442_v46, 0.0  ;;  %v576_v53 = vmul.f32 %v1383_v59, %v442_v46 }
 0x129   :  { %vm559_vm3 = vcmp.gt.f32.partialorder %v506_v47, 0.0  ;;  %v592_v54 = vmul.f32 %v1383_v59, %v506_v47  ;;  %v1054_v55 = vpop.f32.mrf.mxu0  ;;  %v1102_v56 = vpop.f32.mrf.mxu1 }
 0x12a   :  { %v608_v60 = vsel %vm543_vm2, %v442_v46, %v576_v53  ;;  %v447_v62 = vadd.f32 %v1053_v51, %v1376_v50  ;;  %v511_v63 = vadd.f32 %v1101_v52, %v1376_v50 }
 0x12b   :  { %v624_v61 = vsel %vm559_vm3, %v506_v47, %v592_v54  ;;  %v1055_v0 = vpop.f32.mrf.mxu0  ;;  %v1103_v1 = vpop.f32.mrf.mxu1  ;;  %v933_v2 = vpack.c.bf16 %v608_v60, %v607_v57 }
 0x12c   :  { %v973_v3 = vpack.c.bf16 %v624_v61, %v623_v58  ;;  %v1056_v4 = vadd.f32 %v1055_v0, %v1054_v55  ;;  %v1104_v5 = vadd.f32 %v1103_v1, %v1102_v56  ;;  %v577_v8 = vmul.f32 %v1383_v59, %v447_v62 }
 0x12d   :  { %v1057_v6 = vpop.f32.mrf.mxu0  ;;  %v1105_v7 = vpop.f32.mrf.mxu1  ;;  %993 = vst [vmem:[%s1499_s4 + $0x20] sm:$0xff] %v933_v2   ;;  %v593_v9 = vmul.f32 %v1383_v59, %v511_v63  ;;  %vm544_vm4 = vcmp.gt.f32.partialorder %v447_v62, 0.0  ;;  %vm560_vm5 = vcmp.gt.f32.partialorder %v511_v63, 0.0 }
 0x12e   :  { %1001 = vst [vmem:[%s1499_s4 + $0x60] sm:$0xff] %v973_v3   ;;  %v450_v10 = vadd.f32 %v1056_v4, %v1376_v50  ;;  %v514_v11 = vadd.f32 %v1104_v5, %v1376_v50  ;;  %v609_v22 = vsel %vm544_vm4, %v447_v62, %v577_v8 }
 0x12f   :  { %v1058_v12 = vpop.f32.mrf.mxu0  ;;  %v1106_v13 = vpop.f32.mrf.mxu1  ;;  %v625_v23 = vsel %vm560_vm5, %v511_v63, %v593_v9 }
 0x130   :  { %v1059_v14 = vadd.f32 %v1058_v12, %v1057_v6  ;;  %v1107_v15 = vadd.f32 %v1106_v13, %v1105_v7  ;;  %vm545_vm6 = vcmp.gt.f32.partialorder %v450_v10, 0.0  ;;  %v578_v16 = vmul.f32 %v1383_v59, %v450_v10 }
 0x131   :  { %vm561_vm7 = vcmp.gt.f32.partialorder %v514_v11, 0.0  ;;  %v594_v17 = vmul.f32 %v1383_v59, %v514_v11  ;;  %v1060_v18 = vpop.f32.mrf.mxu0  ;;  %v1108_v19 = vpop.f32.mrf.mxu1 }
 0x132   :  { %v455_v20 = vadd.f32 %v1059_v14, %v1376_v50  ;;  %v519_v21 = vadd.f32 %v1107_v15, %v1376_v50  ;;  %v610_v24 = vsel %vm545_vm6, %v450_v10, %v578_v16 }
 0x133   :  { %v626_v25 = vsel %vm561_vm7, %v514_v11, %v594_v17  ;;  %v1061_v26 = vpop.f32.mrf.mxu0  ;;  %v1109_v27 = vpop.f32.mrf.mxu1  ;;  %v938_v28 = vpack.c.bf16 %v610_v24, %v609_v22 }
 0x134   :  { %v978_v29 = vpack.c.bf16 %v626_v25, %v625_v23  ;;  %v1062_v30 = vadd.f32 %v1061_v26, %v1060_v18  ;;  %v1110_v31 = vadd.f32 %v1109_v27, %v1108_v19  ;;  %v579_v34 = vmul.f32 %v1383_v59, %v455_v20 }
 0x135   :  { %v1063_v32 = vpop.f32.mrf.mxu0  ;;  %v1111_v33 = vpop.f32.mrf.mxu1  ;;  %994 = vst [vmem:[%s1499_s4 + $0x28] sm:$0xff] %v938_v28   ;;  %v595_v35 = vmul.f32 %v1383_v59, %v519_v21  ;;  %vm546_vm8 = vcmp.gt.f32.partialorder %v455_v20, 0.0  ;;  %vm562_vm9 = vcmp.gt.f32.partialorder %v519_v21, 0.0 }
 0x136   :  { %1002 = vst [vmem:[%s1499_s4 + $0x68] sm:$0xff] %v978_v29   ;;  %v458_v36 = vadd.f32 %v1062_v30, %v1376_v50  ;;  %v522_v37 = vadd.f32 %v1110_v31, %v1376_v50  ;;  %v611_v46 = vsel %vm546_vm8, %v455_v20, %v579_v34 }
 0x137   :  { %v1064_v38 = vpop.f32.mrf.mxu0  ;;  %v1112_v39 = vpop.f32.mrf.mxu1  ;;  %v627_v47 = vsel %vm562_vm9, %v519_v21, %v595_v35 }
 0x138   :  { %v1065_v40 = vadd.f32 %v1064_v38, %v1063_v32  ;;  %v1113_v41 = vadd.f32 %v1112_v39, %v1111_v33  ;;  %vm547_vm10 = vcmp.gt.f32.partialorder %v458_v36, 0.0  ;;  %v580_v42 = vmul.f32 %v1383_v59, %v458_v36 }
 0x139   :  { %vm563_vm11 = vcmp.gt.f32.partialorder %v522_v37, 0.0  ;;  %v596_v43 = vmul.f32 %v1383_v59, %v522_v37  ;;  %v1066_v44 = vpop.f32.mrf.mxu0  ;;  %v1114_v45 = vpop.f32.mrf.mxu1 }
 0x13a   :  { %v612_v48 = vsel %vm547_vm10, %v458_v36, %v580_v42  ;;  %v463_v51 = vadd.f32 %v1065_v40, %v1376_v50  ;;  %v527_v52 = vadd.f32 %v1113_v41, %v1376_v50 }
 0x13b   :  { %v628_v49 = vsel %vm563_vm11, %v522_v37, %v596_v43  ;;  %v1067_v53 = vpop.f32.mrf.mxu0  ;;  %v1115_v54 = vpop.f32.mrf.mxu1  ;;  %v943_v55 = vpack.c.bf16 %v612_v48, %v611_v46 }
 0x13c   :  { %v983_v56 = vpack.c.bf16 %v628_v49, %v627_v47  ;;  %v1068_v57 = vadd.f32 %v1067_v53, %v1066_v44  ;;  %v1116_v58 = vadd.f32 %v1115_v54, %v1114_v45  ;;  %v581_v60 = vmul.f32 %v1383_v59, %v463_v51 }
 0x13d   :  { %995 = vst [vmem:[%s1499_s4 + $0x30] sm:$0xff] %v943_v55   ;;  %v597_v61 = vmul.f32 %v1383_v59, %v527_v52  ;;  %vm548_vm12 = vcmp.gt.f32.partialorder %v463_v51, 0.0  ;;  %vm564_vm13 = vcmp.gt.f32.partialorder %v527_v52, 0.0 }
 0x13e   :  { %1003 = vst [vmem:[%s1499_s4 + $0x70] sm:$0xff] %v983_v56   ;;  %v466_v62 = vadd.f32 %v1068_v57, %v1376_v50  ;;  %v530_v63 = vadd.f32 %v1116_v58, %v1376_v50  ;;  %v613_v2 = vsel %vm548_vm12, %v463_v51, %v581_v60 }
 0x13f   :  { %v629_v3 = vsel %vm564_vm13, %v527_v52, %v597_v61 }
 0x140   :  { %vm549_vm14 = vcmp.gt.f32.partialorder %v466_v62, 0.0  ;;  %v582_v0 = vmul.f32 %v1383_v59, %v466_v62  ;;  %vm565_vm15 = vcmp.gt.f32.partialorder %v530_v63, 0.0  ;;  %v598_v1 = vmul.f32 %v1383_v59, %v530_v63 }
 0x142   :  { %v614_v4 = vsel %vm549_vm14, %v466_v62, %v582_v0  ;;  %v630_v5 = vsel %vm565_vm15, %v530_v63, %v598_v1 }
 0x143   :  { %v948_v6 = vpack.c.bf16 %v614_v4, %v613_v2  ;;  %v988_v7 = vpack.c.bf16 %v630_v5, %v629_v3 }
 0x145   :  { %996 = vst [vmem:[%s1499_s4 + $0x38] sm:$0xff] %v948_v6   ;;  %1004 = vst [vmem:[%s1499_s4 + $0x78] sm:$0xff] %v988_v7  }
 0x146   :  { %795 = vsyncpa [#allocation4], 1 }
 0x147   :  { %796 = vsyncpa [#allocation6], 1 }

// kernel: d_upblock_forward.5
= control target key start
LH: loop header
LB: loop body
LE: loop exit
PB: predicated region body
PF: predicated region fallthrough
CT: control target
= control target key end

     0   :  { %s1268_s0 = inlined_call_operand.vmem [shape: bf16[2,18,16,96], index: 0, kind: input, shape index: {}]   ;;  %s1269_s1 = inlined_call_operand.hbm [shape: bf16[3,96,512], index: 1, kind: input, shape index: {}]   ;;  %s1270_s2 = inlined_call_operand.hbm [shape: f32[1,512], index: 2, kind: input, shape index: {}]   ;;  %s1271_s3 = inlined_call_operand.<no memory space> [shape: f32[1,1], index: 3, kind: input, shape index: {}]   ;;  %s1272_s4 = inlined_call_operand.vmem [shape: bf16[2,16,16,512], index: 4, kind: output, shape index: {}]  }
   0x1   :  { %9 = sst [smem:[#allocation3]] %s1271_s3 }
   0x2   :  { %10 = vsyncpa [#allocation5], 0 }
   0x3   :  { %11 = vsyncpa [#allocation7], 0  ;;  %s1104_s17 = smov 0   ;;  %s1106_s18 = smov 0  }
   0x4   :  { %s1108_s19 = smov 0   ;;  %s1110_s20 = smov 0  }
   0x5   :  { %s1112_s21 = smov 0   ;;  %s1114_s22 = smov 0  }
   0x6   :  { %s1116_s23 = smov 0  }
   0x7 LB: > { %s780_s3 = sadd.s32 4294967295, %s1068_s23   ;;  %s29_s24 = sadd.s32 1, %s1056_s20  ;;  %s1068_s23 = sphi %s1116_s23, %s17_s23   ;;  %s1064_s22 = sphi %s1114_s22, %s1281_s22   ;;  %s1060_s21 = sphi %s1112_s21, %s1280_s21   ;;  %s1056_s20 = sphi %s1110_s20, %s1279_s20   ;;  %s1052_s19 = sphi %s1108_s19, %s1278_s19   ;;  %s1048_s18 = sphi %s1106_s18, %s1277_s18   ;;  %s1044_s17 = sphi %s1104_s17, %s1276_s17  }
   0x8   : > { %p30_p0 = scmp.ge.s32.totalorder %s29_s24, 3  ;;  %s32_s25 = sadd.s32 1, %s1060_s21 }
   0x9   : > { %s36_s26 = sadd.s32 1, %s1064_s22  ;;  %p782_p1 = scmp.ge.s32.totalorder %s1068_s23, 1 }
   0xa   : > { %s1283_s24 = smov (%p30_p0, %s29_s24), 0  ;;  %s1285_s25 = smov (!%p30_p0, %s32_s25), %s1060_s21 }
   0xb   : > { %p162_p2 = scmp.lt.s32.totalorder %s1068_s23, 97  ;;  %p34_p3 = scmp.ge.s32.totalorder %s1285_s25, 16 }
   0xc   : > { %p1148_p4 = scmp.eq.s32.totalorder %s780_s3, 0  ;;  %s1070_s29 = smov [#allocation4]  }
   0xd   : > { %p1152_p5 = pnand %p782_p1, %p162_p2  ;;  %s1287_s25 = smov (%p34_p3, %s1285_s25), 0 }
   0xe   : > { %s1289_s26 = smov (!%p34_p3, %s36_s26), %s1064_s22  ;;  %s174_s30 = sshll.u32 %s1070_s29, 4  ;;  %s175_s30 = int_to_ptr.vmem [resolvable:$true] %s174_s30 }
   0xf   : > { %p844_p6 = pneg %p1152_p5  ;;  %p38_p7 = scmp.ge.s32.totalorder %s1289_s26, 2 }
  0x10   : > { %s965_s6 = scalar_lea.vmem %s175_s30, 9216  ;;  %p973_p13 = scmp.lt.s32.totalorder %s175_s30, %s175_s30 }
  0x11   : > { %p1163_p8 = pnand %p1148_p4, %p844_p6  ;;  %s1291_s26 = smov (%p38_p7, %s1289_s26), 0 }
  0x12   : > { %p966_p10 = scmp.ne.s32.totalorder %s175_s30, %s965_s6  ;;  %p974_p0 = scmp.lt.s32.totalorder %s965_s6, %s965_s6 }
  0x13   : > { %p956_p9 = pneg %p1163_p8 }
  0x14   : > { %p975_p1 = por %p974_p0, %p973_p13 }
  0x15   : > { %p968_p11 = pnand %p966_p10, %p956_p9 }
  0x17   : > { %p969_p12 = pneg %p968_p11 }
  0x19   : > { %p976_p2 = pnand %p975_p1, %p969_p12 }
  0x1b   : > { %979 = shalt.err (!%p976_p2)
}
  0x1c   : > { %s1071_s7 = smov 256   ;;  %s1072_s8 = smov 16  }
  0x1d   : > { %847 = dma.hbm_to_vmem [thread:$0]  (!%p1163_p8), %s1269_s1, 9216, %s175_s30, [#allocation5], %s1071_s7, %s1071_s7, %s1072_s8  }
  0x1e   : > { %s1073_s11 = smov [#allocation6]  }
  0x1f   : > { %s188_s12 = sshll.u32 %s1073_s11, 4  ;;  %s189_s12 = int_to_ptr.vmem [resolvable:$true] %s188_s12 }
  0x20   : > { %s991_s13 = scalar_lea.vmem %s189_s12, 64  ;;  %p999_p10 = scmp.lt.s32.totalorder %s189_s12, %s189_s12 }
  0x21   : > { %p992_p3 = scmp.ne.s32.totalorder %s189_s12, %s991_s13  ;;  %p1000_p11 = scmp.lt.s32.totalorder %s991_s13, %s991_s13 }
  0x23   : > { %p994_p6 = pnand %p992_p3, %p956_p9  ;;  %p1001_p12 = por %p1000_p11, %p999_p10 }
  0x25   : > { %p995_p7 = pneg %p994_p6 }
  0x27   : > { %p1002_p13 = pnand %p1001_p12, %p995_p7 }
  0x29   : > { %1005 = shalt.err (!%p1002_p13)
}
  0x2a   : > { %850 = dma.hbm_to_vmem [thread:$0]  (!%p1163_p8), %s1270_s2, 64, %s189_s12, [#allocation7]  }
  0x2b   : > { %218 = sbr.rel (%p1152_p5) target bundleno = 320 (0x140), region = 36 }
  0x30   : > { %1035 = dma.done.wait (%p1148_p4), [#allocation5], 9216  }
  0x31   : > { %1037 = vsyncadd (%p1148_p4), [#allocation5], 4294958080 }
  0x32   : > { %1039 = dma.done.wait (%p1148_p4), [#allocation7], 64  }
  0x33   : > { %1041 = vsyncadd (%p1148_p4), [#allocation7], 4294967232  ;;  %s257_s16 = sadd.s32 %s1044_s17, %s1048_s18  ;;  %p258_p5 = scmp.lt.s32.totalorder %s1052_s19, 1 }
  0x34   : > { %p260_p8 = scmp.lt.s32.totalorder %s257_s16, 17  ;;  %p270_p9 = scmp.lt.s32.totalorder %s1048_s18, 15 }
  0x35   : > { %s1293_s19 = smov (!%p258_p5, %s1052_s19), 1  ;;  %p794_p4 = scmp.ne.s32.totalorder %s1044_s17, 0 }
  0x36   : > { %s1295_s16 = smov (!%p260_p8, %s257_s16), 17  ;;  %s835_s3 = smul.u32 36, %s1293_s19 }
  0x37   : > { %s789_s28 = sshll.u32 %s1295_s16, 1  ;;  %s792_s7 = sshll.u32 %s1293_s19, 7 }
  0x38   : > { %s264_s29 = sadd.s32 %s835_s3, %s789_s28  ;;  %s1297_s18 = smov (!%p270_p9, %s1048_s18), 15 }
  0x39   : > { %s790_s30 = sshll.u32 %s264_s29, 2  ;;  %s791_s8 = sshll.u32 %s1297_s18, 3 }
  0x3a   : > { %s1205_s27 = scalar_lea.vmem %s1268_s0, %s790_s30  ;;  %s274_s9 = sadd.s32 %s792_s7, %s791_s8 }
  0x3b   : > { %s793_s10 = sshll.u32 %s274_s9, 2  ;;  %281 = sbr.rel (%p794_p4) target bundleno = 69 (0x45), region = 48 }
  0x3c   : > { %s1211_s13 = scalar_lea.vmem %s1272_s4, %s793_s10 }
  0x40   : > { %v1074_v0 = vmov 0.0  }
  0x41   : > { %282 = vst [vmem:[#allocation2 + $0x30] sm:$0xff] %v1074_v0  ;;  %283 = vst [vmem:[#allocation2] sm:$0xff] %v1074_v0 }
  0x42   : > { %284 = vst [vmem:[#allocation2 + $0x18] sm:$0xff] %v1074_v0  ;;  %285 = vst [vmem:[#allocation2 + $0x10] sm:$0xff] %v1074_v0 }
  0x43   : > { %286 = vst [vmem:[#allocation2 + $0x8] sm:$0xff] %v1074_v0  ;;  %287 = vst [vmem:[#allocation2 + $0x20] sm:$0xff] %v1074_v0 }
  0x44   : > { %288 = vst [vmem:[#allocation2 + $0x28] sm:$0xff] %v1074_v0  ;;  %289 = vst [vmem:[#allocation2 + $0x38] sm:$0xff] %v1074_v0 }
  0x45 PF: > { %s830_s18 = smul.u32 192, %s1044_s17  ;;  %v1075_v1 = vmov 0   ;;  %v953_v26 = vld [vmem:[%s1205_s27] sm:$0xff]   ;;  %vm452_vm0 = vcmask 785408   ;;  %p823_p0 = scmp.ne.s32.totalorder %s1044_s17, 2 }
  0x46   : > { %488 = vmatprep.mubr.bf16.mxu0 %v1075_v1  ;;  %531 = vmatprep.mubr.bf16.mxu1 %v1075_v1  ;;  %s600_s14 = sld [smem:[#allocation3]] (!%p823_p0) }
  0x47   : > { %s1215_s19 = scalar_lea.vmem [#allocation4], %s830_s18 }
  0x48   : > { %v917_v2 = vld [vmem:[%s1215_s19 + $0xa4] ss:$16 sps:$4 sm:$0xff]   ;;  %v919_v3 = vld [vmem:[%s1215_s19 + $0xac] ss:$16 sps:$4 sm:$0xff]   ;;  %v921_v4 = vld [vmem:[%s1215_s19 + $0xa0] ss:$16 sps:$4 sm:$0xff]  }
  0x49   : > { %460 = vmatprep.subr.bf16.mxu0 %v917_v2  ;;  %v922_v5 = vld [vmem:[%s1215_s19 + $0xa8] ss:$16 sps:$4 sm:$0xff]   ;;  %503 = vmatprep.subr.bf16.mxu1 %v919_v3  ;;  %v923_v6 = vld [vmem:[%s1215_s19 + $0x84] ss:$16 sps:$4 sm:$0xff]   ;;  %v925_v7 = vld [vmem:[%s1215_s19 + $0x8c] ss:$16 sps:$4 sm:$0xff]  }
  0x4a   : > { %461 = vmatpush1.bf16.msra.mxu0 %v921_v4  ;;  %504 = vmatpush1.bf16.msra.mxu1 %v922_v5  ;;  %v927_v8 = vld [vmem:[%s1215_s19 + $0x80] ss:$16 sps:$4 sm:$0xff]   ;;  %v928_v9 = vld [vmem:[%s1215_s19 + $0x88] ss:$16 sps:$4 sm:$0xff]   ;;  %v929_v10 = vld [vmem:[%s1215_s19 + $0x64] ss:$16 sps:$4 sm:$0xff]  }
  0x4b   : > { %462 = vmatprep.subr.bf16.mxu0 %v923_v6  ;;  %505 = vmatprep.subr.bf16.mxu1 %v925_v7  ;;  %v931_v11 = vld [vmem:[%s1215_s19 + $0x6c] ss:$16 sps:$4 sm:$0xff]   ;;  %v933_v12 = vld [vmem:[%s1215_s19 + $0x60] ss:$16 sps:$4 sm:$0xff]   ;;  %v934_v13 = vld [vmem:[%s1215_s19 + $0x68] ss:$16 sps:$4 sm:$0xff]  }
  0x4c   : > { %v935_v14 = vld [vmem:[%s1215_s19 + $0x44] ss:$16 sps:$4 sm:$0xff]   ;;  %v937_v15 = vld [vmem:[%s1215_s19 + $0x4c] ss:$16 sps:$4 sm:$0xff]   ;;  %v939_v16 = vld [vmem:[%s1215_s19 + $0x40] ss:$16 sps:$4 sm:$0xff]  }
  0x4d   : > { %v940_v17 = vld [vmem:[%s1215_s19 + $0x48] ss:$16 sps:$4 sm:$0xff]   ;;  %v941_v18 = vld [vmem:[%s1215_s19 + $0x24] ss:$16 sps:$4 sm:$0xff]   ;;  %v943_v19 = vld [vmem:[%s1215_s19 + $0x2c] ss:$16 sps:$4 sm:$0xff]  }
  0x4e   : > { %463 = vmatpush1.bf16.msra.mxu0 %v927_v8  ;;  %506 = vmatpush1.bf16.msra.mxu1 %v928_v9  ;;  %v945_v20 = vld [vmem:[%s1215_s19 + $0x20] ss:$16 sps:$4 sm:$0xff]   ;;  %v946_v21 = vld [vmem:[%s1215_s19 + $0x28] ss:$16 sps:$4 sm:$0xff]   ;;  %v947_v22 = vld [vmem:[%s1215_s19 + $0x4] ss:$16 sps:$4 sm:$0xff]  }
  0x4f   : > { %464 = vmatprep.subr.bf16.mxu0 %v929_v10  ;;  %507 = vmatprep.subr.bf16.mxu1 %v931_v11  ;;  %v949_v23 = vld [vmem:[%s1215_s19 + $0xc] ss:$16 sps:$4 sm:$0xff]   ;;  %v951_v24 = vld [vmem:[%s1215_s19] ss:$16 sps:$4 sm:$0xff]   ;;  %v952_v25 = vld [vmem:[%s1215_s19 + $0x8] ss:$16 sps:$4 sm:$0xff]  }
  0x50   : > { %v319_v27 = vld [vmem:[#allocation2 + $0x30] sm:$0xff]  ;;  %v321_v28 = vld [vmem:[#allocation2 + $0x18] sm:$0xff]  ;;  %v320_v31 = vld [vmem:[#allocation2] sm:$0xff] }
  0x51   : > { %v322_v32 = vld [vmem:[#allocation2 + $0x10] sm:$0xff]  ;;  %v323_v37 = vld [vmem:[#allocation2 + $0x8] sm:$0xff]  ;;  %v324_v43 = vld [vmem:[#allocation2 + $0x20] sm:$0xff] }
  0x52   : > { %465 = vmatpush1.bf16.msra.mxu0 %v933_v12  ;;  %508 = vmatpush1.bf16.msra.mxu1 %v934_v13  ;;  %v325_v38 = vld [vmem:[#allocation2 + $0x28] sm:$0xff]  ;;  %v326_v44 = vld [vmem:[#allocation2 + $0x38] sm:$0xff] }
  0x53   : > { %466 = vmatprep.subr.bf16.mxu0 %v935_v14  ;;  %509 = vmatprep.subr.bf16.mxu1 %v937_v15 }
  0x56   : > { %467 = vmatpush1.bf16.msra.mxu0 %v939_v16  ;;  %510 = vmatpush1.bf16.msra.mxu1 %v940_v17 }
  0x57   : > { %468 = vmatprep.subr.bf16.mxu0 %v941_v18  ;;  %511 = vmatprep.subr.bf16.mxu1 %v943_v19 }
  0x5a   : > { %469 = vmatpush1.bf16.msra.mxu0 %v945_v20  ;;  %512 = vmatpush1.bf16.msra.mxu1 %v946_v21 }
  0x5b   : > { %470 = vmatprep.subr.bf16.mxu0 %v947_v22  ;;  %513 = vmatprep.subr.bf16.mxu1 %v949_v23 }
  0x5e   : > { %471 = vmatpush1.bf16.msra.mxu0 %v951_v24  ;;  %514 = vmatpush1.bf16.msra.mxu1 %v952_v25 }
  0x61   : > { %821 = vmatmul.mubr.msk.bf16.vlgmr.msra.gmra.mxu0 %vm452_vm0, %v953_v26  ;;  %822 = vmatmul.mubr.msk.bf16.vlgmr.msra.gmra.mxu1 %vm452_vm0, %v953_v26 }
 0x121   : > { %v490_v29 = vpop.f32.mrf.mxu0  ;;  %v533_v30 = vpop.f32.mrf.mxu1 }
 0x122   : > { %v542_v33 = vadd.f32 %v490_v29, %v319_v27  ;;  %v544_v34 = vadd.f32 %v533_v30, %v321_v28 }
 0x123   : > { %v492_v35 = vpop.f32.mrf.mxu0  ;;  %v535_v36 = vpop.f32.mrf.mxu1 }
 0x124   : > { %550 = vst [vmem:[#allocation2 + $0x30] sm:$0xff] %v542_v33  ;;  %552 = vst [vmem:[#allocation2 + $0x18] sm:$0xff] %v544_v34  ;;  %v543_v39 = vadd.f32 %v492_v35, %v320_v31  ;;  %v545_v40 = vadd.f32 %v535_v36, %v322_v32 }
 0x125   : > { %v494_v41 = vpop.f32.mrf.mxu0  ;;  %v537_v42 = vpop.f32.mrf.mxu1 }
 0x126   : > { %551 = vst [vmem:[#allocation2] sm:$0xff] %v543_v39  ;;  %553 = vst [vmem:[#allocation2 + $0x10] sm:$0xff] %v545_v40  ;;  %v546_v45 = vadd.f32 %v494_v41, %v323_v37  ;;  %v548_v46 = vadd.f32 %v537_v42, %v325_v38  ;;  %561 = sbr.rel (%p823_p0) target bundleno = 320 (0x140), region = 52 }
 0x127   : > { %v496_v47 = vpop.f32.mrf.mxu0  ;;  %v539_v48 = vpop.f32.mrf.mxu1 }
 0x128   : > { %554 = vst [vmem:[#allocation2 + $0x8] sm:$0xff] %v546_v45  ;;  %556 = vst [vmem:[#allocation2 + $0x28] sm:$0xff] %v548_v46  ;;  %v547_v49 = vadd.f32 %v496_v47, %v324_v43  ;;  %v549_v50 = vadd.f32 %v539_v48, %v326_v44 }
 0x12a   : > { %555 = vst [vmem:[#allocation2 + $0x20] sm:$0xff] %v547_v49  ;;  %557 = vst [vmem:[#allocation2 + $0x38] sm:$0xff] %v549_v50 }
 0x12b   : > { %v572_v51 = vlaneseq  ;;  %v570_v53 = vld [vmem:[#allocation6] sm:$0xf]  ;;  %v562_v54 = vld [vmem:[#allocation2 + $0x30] sm:$0xff]  ;;  %v564_v60 = vld [vmem:[#allocation2 + $0x18] sm:$0xff]  ;;  %v609_v5 = vstv %s600_s14 }
 0x12d   : > { %v573_v52 = vshrl.u32 %v572_v51, 7  ;;  %v563_v55 = vld [vmem:[#allocation2] sm:$0xff]  ;;  %v565_v61 = vld [vmem:[#allocation2 + $0x10] sm:$0xff] }
 0x12f   : > { %v574_v56 = vsub.s32 0, %v573_v52  ;;  %v578_v57 = vsub.s32 1, %v573_v52  ;;  %v582_v58 = vsub.s32 2, %v573_v52  ;;  %v586_v59 = vsub.s32 3, %v573_v52  ;;  %v566_v62 = vld [vmem:[#allocation2 + $0x8] sm:$0xff] }
 0x130   : > { %v568_v3 = vld [vmem:[#allocation2 + $0x28] sm:$0xff] }
 0x131   : > { %v575_v63 = vrot.slane %v570_v53, %v574_v56  ;;  %v579_v0 = vrot.slane %v570_v53, %v578_v57  ;;  %v583_v1 = vrot.slane %v570_v53, %v582_v58  ;;  %v567_v2 = vld [vmem:[#allocation2 + $0x20] sm:$0xff]  ;;  %v569_v4 = vld [vmem:[#allocation2 + $0x38] sm:$0xff]  ;;  %v587_v6 = vrot.slane %v570_v53, %v586_v59 }
 0x133   : > { %v592_v7 = vadd.f32 %v575_v63, %v562_v54  ;;  %v593_v8 = vadd.f32 %v579_v0, %v563_v55  ;;  %v594_v9 = vadd.f32 %v583_v1, %v564_v60  ;;  %v596_v10 = vadd.f32 %v575_v63, %v566_v62 }
 0x134   : > { %v595_v11 = vadd.f32 %v587_v6, %v565_v61  ;;  %v597_v12 = vadd.f32 %v579_v0, %v567_v2  ;;  %v598_v13 = vadd.f32 %v583_v1, %v568_v3  ;;  %v599_v14 = vadd.f32 %v587_v6, %v569_v4 }
 0x135   : > { %vm601_vm1 = vcmp.gt.f32.partialorder %v592_v7, 0.0  ;;  %vm602_vm2 = vcmp.gt.f32.partialorder %v593_v8, 0.0  ;;  %v610_v15 = vmul.f32 %v609_v5, %v592_v7  ;;  %v611_v16 = vmul.f32 %v609_v5, %v593_v8 }
 0x136   : > { %vm603_vm3 = vcmp.gt.f32.partialorder %v594_v9, 0.0  ;;  %vm604_vm4 = vcmp.gt.f32.partialorder %v595_v11, 0.0  ;;  %v612_v17 = vmul.f32 %v609_v5, %v594_v9  ;;  %v613_v18 = vmul.f32 %v609_v5, %v595_v11 }
 0x137   : > { %v618_v19 = vsel %vm601_vm1, %v592_v7, %v610_v15  ;;  %v619_v20 = vsel %vm602_vm2, %v593_v8, %v611_v16  ;;  %vm605_vm5 = vcmp.gt.f32.partialorder %v596_v10, 0.0  ;;  %vm606_vm6 = vcmp.gt.f32.partialorder %v597_v12, 0.0 }
 0x138   : > { %v831_v21 = vpack.c.bf16 %v619_v20, %v618_v19  ;;  %v620_v22 = vsel %vm603_vm3, %v594_v9, %v612_v17  ;;  %v621_v23 = vsel %vm604_vm4, %v595_v11, %v613_v18  ;;  %v614_v24 = vmul.f32 %v609_v5, %v596_v10 }
 0x139   : > { %v832_v25 = vpack.c.bf16 %v621_v23, %v620_v22  ;;  %v615_v26 = vmul.f32 %v609_v5, %v597_v12  ;;  %vm607_vm7 = vcmp.gt.f32.partialorder %v598_v13, 0.0  ;;  %vm608_vm8 = vcmp.gt.f32.partialorder %v599_v14, 0.0 }
 0x13a   : > { %650 = vst [vmem:[%s1211_s13] sm:$0xff] %v831_v21  ;;  %v622_v27 = vsel %vm605_vm5, %v596_v10, %v614_v24  ;;  %v616_v28 = vmul.f32 %v609_v5, %v598_v13  ;;  %v617_v29 = vmul.f32 %v609_v5, %v599_v14 }
 0x13b   : > { %651 = vst [vmem:[%s1211_s13 + $0x8] sm:$0xff] %v832_v25  ;;  %v623_v30 = vsel %vm606_vm6, %v597_v12, %v615_v26 }
 0x13c   : > { %v833_v31 = vpack.c.bf16 %v623_v30, %v622_v27  ;;  %v624_v32 = vsel %vm607_vm7, %v598_v13, %v616_v28  ;;  %v625_v33 = vsel %vm608_vm8, %v599_v14, %v617_v29 }
 0x13d   : > { %v834_v34 = vpack.c.bf16 %v625_v33, %v624_v32 }
 0x13e   : > { %652 = vst [vmem:[%s1211_s13 + $0x10] sm:$0xff] %v833_v31 }
 0x13f   : > { %653 = vst [vmem:[%s1211_s13 + $0x18] sm:$0xff] %v834_v34 }
 0x140 PF: > { %s17_s23 = sadd.s32 1, %s1068_s23   ;;  %s1276_s17 = smov %s1056_s20 }
 0x141   : > { %p14_p1 = scmp.ge.s32.totalorder %s17_s23, 98   ;;  %s1277_s18 = smov %s1060_s21 }
 0x142   : > { %s1278_s19 = smov %s1064_s22  ;;  %s1279_s20 = smov %s1283_s24 }
 0x143   : > { %s1280_s21 = smov %s1287_s25  ;;  %s1281_s22 = smov %s1291_s26 }
 0x144   :  { %16 = sbr.rel (!%p14_p1) target bundleno = 7 (0x7), region = 84 }
 0x149   :  { %683 = vsyncpa [#allocation5], 1 }
 0x14a   :  { %685 = vsyncpa [#allocation5 + $0x1], 1 }
 0x14b   :  { %686 = vsyncpa [#allocation7], 1 }

// kernel: d_upblock_forward.7
= control target key start
LH: loop header
LB: loop body
LE: loop exit
PB: predicated region body
PF: predicated region fallthrough
CT: control target
= control target key end

     0   :  { %s1044_s20 = smov 0   ;;  %s1046_s21 = smov 0   ;;  %s1186_s0 = inlined_call_operand.vmem [shape: bf16[2,18,16,96], index: 0, kind: input, shape index: {}]   ;;  %s1187_s1 = inlined_call_operand.vmem [shape: bf16[3,96,512], index: 1, kind: input, shape index: {}]   ;;  %s1188_s2 = inlined_call_operand.vmem [shape: f32[1,512], index: 2, kind: input, shape index: {}]   ;;  %s1189_s3 = inlined_call_operand.<no memory space> [shape: f32[1,1], index: 3, kind: input, shape index: {}]   ;;  %s1190_s4 = inlined_call_operand.vmem [shape: bf16[2,16,16,512], index: 4, kind: input, shape index: {}]   ;;  %s1191_s5 = inlined_call_operand.vmem [shape: f32[2,16,16,512], index: 5, kind: output, shape index: {}]  }
   0x1   :  { %10 = sst [smem:[#allocation3]] %s1189_s3  ;;  %s1048_s22 = smov 0  }
   0x2   :  { %s1050_s23 = smov 0   ;;  %s1052_s24 = smov 0  }
   0x3   :  { %s1054_s25 = smov 0   ;;  %s1056_s26 = smov 0  }
   0x4 LB: > { %s28_s3 = sadd.s32 1, %s995_s23  ;;  %s31_s27 = sadd.s32 1, %s999_s24  ;;  %s1007_s26 = sphi %s1056_s26, %s16_s26   ;;  %s1003_s25 = sphi %s1054_s25, %s1199_s25   ;;  %s999_s24 = sphi %s1052_s24, %s1198_s24   ;;  %s995_s23 = sphi %s1050_s23, %s1197_s23   ;;  %s991_s22 = sphi %s1048_s22, %s1196_s22   ;;  %s987_s21 = sphi %s1046_s21, %s1195_s21   ;;  %s983_s20 = sphi %s1044_s20, %s1194_s20  }
   0x5   : > { %p29_p0 = scmp.ge.s32.totalorder %s28_s3, 3  ;;  %p815_p1 = scmp.ge.s32.totalorder %s1007_s26, 1 }
   0x6   : > { %p235_p2 = scmp.lt.s32.totalorder %s1007_s26, 97  ;;  %s35_s28 = sadd.s32 1, %s1003_s25 }
   0x7   : > { %s1201_s3 = smov (%p29_p0, %s28_s3), 0  ;;  %s1203_s27 = smov (!%p29_p0, %s31_s27), %s999_s24 }
   0x8   : > { %p236_p3 = pnand %p815_p1, %p235_p2  ;;  %p33_p4 = scmp.ge.s32.totalorder %s1203_s27, 16 }
   0x9   : > { %s281_s29 = sadd.s32 (!%p236_p3), %s983_s20, %s987_s21  ;;  %p282_p6 = scmp.lt.s32.totalorder (!%p236_p3), %s991_s22, 1 }
   0xa   : > { %s1205_s27 = smov (%p33_p4, %s1203_s27), 0  ;;  %s1207_s28 = smov (!%p33_p4, %s35_s28), %s1003_s25 }
   0xb   : > { %p37_p5 = scmp.ge.s32.totalorder %s1207_s28, 2  ;;  %239 = sbr.rel (%p236_p3) target bundleno = 285 (0x11d), region = 40 }
   0xc   : > { %p284_p7 = scmp.lt.s32.totalorder (!%p236_p3), %s281_s29, 17  ;;  %p294_p8 = scmp.lt.s32.totalorder (!%p236_p3), %s987_s21, 15 }
   0xd   : > { %s1209_s28 = smov (%p37_p5, %s1207_s28), 0  ;;  %p824_p9 = scmp.ne.s32.totalorder (!%p236_p3), %s983_s20, 0 }
   0xe   : > { %1192 = sst [smem:[#allocation4_spill]] %s1209_s28 }
  0x10   : > { %s1211_s22 = smov (!%p282_p6, %s991_s22), 1  ;;  %s1213_s29 = smov (!%p284_p7, %s281_s29), 17 }
  0x11   : > { %s857_s30 = smul.u32 36, %s1211_s22  ;;  %s816_s6 = sshll.u32 %s1213_s29, 1 }
  0x12   : > { %s819_s12 = sshll.u32 %s1211_s22, 7  ;;  %s1215_s21 = smov (!%p294_p8, %s987_s21), 15 }
  0x13   : > { %s288_s7 = sadd.s32 %s857_s30, %s816_s6  ;;  %s818_s13 = sshll.u32 %s1215_s21, 3 }
  0x14   : > { %s817_s8 = sshll.u32 %s288_s7, 2  ;;  %s298_s14 = sadd.s32 %s819_s12, %s818_s13 }
  0x15   : > { %s1096_s11 = scalar_lea.vmem %s1186_s0, %s817_s8  ;;  %s820_s15 = sshll.u32 %s298_s14, 2 }
  0x16   : > { %s823_s16 = sshll.u32 %s298_s14, 3  ;;  %s1102_s19 = scalar_lea.vmem %s1190_s4, %s820_s15 }
  0x17   : > { %s1107_s30 = scalar_lea.vmem %s1191_s5, %s823_s16  ;;  %314 = sbr.rel (%p824_p9) target bundleno = 33 (0x21), region = 44 }
  0x1c   : > { %v1009_v0 = vmov 0.0  }
  0x1d   : > { %315 = vst [vmem:[#allocation2 + $0x30] sm:$0xff] %v1009_v0  ;;  %316 = vst [vmem:[#allocation2] sm:$0xff] %v1009_v0 }
  0x1e   : > { %317 = vst [vmem:[#allocation2 + $0x18] sm:$0xff] %v1009_v0  ;;  %318 = vst [vmem:[#allocation2 + $0x10] sm:$0xff] %v1009_v0 }
  0x1f   : > { %319 = vst [vmem:[#allocation2 + $0x8] sm:$0xff] %v1009_v0  ;;  %320 = vst [vmem:[#allocation2 + $0x20] sm:$0xff] %v1009_v0 }
  0x20   : > { %321 = vst [vmem:[#allocation2 + $0x28] sm:$0xff] %v1009_v0  ;;  %322 = vst [vmem:[#allocation2 + $0x38] sm:$0xff] %v1009_v0 }
  0x21 PF: > { %s856_s21 = smul.u32 192, %s983_s20  ;;  %v1010_v1 = vmov 0   ;;  %v952_v26 = vld [vmem:[%s1096_s11] sm:$0xff]   ;;  %vm485_vm0 = vcmask 785408   ;;  %p853_p10 = scmp.ne.s32.totalorder %s983_s20, 2 }
  0x22   : > { %521 = vmatprep.mubr.bf16.mxu0 %v1010_v1  ;;  %564 = vmatprep.mubr.bf16.mxu1 %v1010_v1  ;;  %s633_s7 = sld [smem:[#allocation3]] (!%p853_p10) }
  0x23   : > { %s1114_s6 = scalar_lea.vmem %s1187_s1, %s856_s21 }
  0x24   : > { %v916_v2 = vld [vmem:[%s1114_s6 + $0xa4] ss:$16 sps:$4 sm:$0xff]   ;;  %v918_v3 = vld [vmem:[%s1114_s6 + $0xac] ss:$16 sps:$4 sm:$0xff]   ;;  %v920_v4 = vld [vmem:[%s1114_s6 + $0xa0] ss:$16 sps:$4 sm:$0xff]  }
  0x25   : > { %493 = vmatprep.subr.bf16.mxu0 %v916_v2  ;;  %v921_v5 = vld [vmem:[%s1114_s6 + $0xa8] ss:$16 sps:$4 sm:$0xff]   ;;  %536 = vmatprep.subr.bf16.mxu1 %v918_v3  ;;  %v922_v6 = vld [vmem:[%s1114_s6 + $0x84] ss:$16 sps:$4 sm:$0xff]   ;;  %v924_v7 = vld [vmem:[%s1114_s6 + $0x8c] ss:$16 sps:$4 sm:$0xff]  }
  0x26   : > { %494 = vmatpush1.bf16.msra.mxu0 %v920_v4  ;;  %537 = vmatpush1.bf16.msra.mxu1 %v921_v5  ;;  %v926_v8 = vld [vmem:[%s1114_s6 + $0x80] ss:$16 sps:$4 sm:$0xff]   ;;  %v927_v9 = vld [vmem:[%s1114_s6 + $0x88] ss:$16 sps:$4 sm:$0xff]   ;;  %v928_v10 = vld [vmem:[%s1114_s6 + $0x64] ss:$16 sps:$4 sm:$0xff]  }
  0x27   : > { %495 = vmatprep.subr.bf16.mxu0 %v922_v6  ;;  %538 = vmatprep.subr.bf16.mxu1 %v924_v7  ;;  %v930_v11 = vld [vmem:[%s1114_s6 + $0x6c] ss:$16 sps:$4 sm:$0xff]   ;;  %v932_v12 = vld [vmem:[%s1114_s6 + $0x60] ss:$16 sps:$4 sm:$0xff]   ;;  %v933_v13 = vld [vmem:[%s1114_s6 + $0x68] ss:$16 sps:$4 sm:$0xff]  }
  0x28   : > { %v934_v14 = vld [vmem:[%s1114_s6 + $0x44] ss:$16 sps:$4 sm:$0xff]   ;;  %v936_v15 = vld [vmem:[%s1114_s6 + $0x4c] ss:$16 sps:$4 sm:$0xff]   ;;  %v938_v16 = vld [vmem:[%s1114_s6 + $0x40] ss:$16 sps:$4 sm:$0xff]  }
  0x29   : > { %v939_v17 = vld [vmem:[%s1114_s6 + $0x48] ss:$16 sps:$4 sm:$0xff]   ;;  %v940_v18 = vld [vmem:[%s1114_s6 + $0x24] ss:$16 sps:$4 sm:$0xff]   ;;  %v942_v19 = vld [vmem:[%s1114_s6 + $0x2c] ss:$16 sps:$4 sm:$0xff]  }
  0x2a   : > { %496 = vmatpush1.bf16.msra.mxu0 %v926_v8  ;;  %539 = vmatpush1.bf16.msra.mxu1 %v927_v9  ;;  %v944_v20 = vld [vmem:[%s1114_s6 + $0x20] ss:$16 sps:$4 sm:$0xff]   ;;  %v945_v21 = vld [vmem:[%s1114_s6 + $0x28] ss:$16 sps:$4 sm:$0xff]   ;;  %v946_v22 = vld [vmem:[%s1114_s6 + $0x4] ss:$16 sps:$4 sm:$0xff]  }
  0x2b   : > { %497 = vmatprep.subr.bf16.mxu0 %v928_v10  ;;  %540 = vmatprep.subr.bf16.mxu1 %v930_v11  ;;  %v948_v23 = vld [vmem:[%s1114_s6 + $0xc] ss:$16 sps:$4 sm:$0xff]   ;;  %v950_v24 = vld [vmem:[%s1114_s6] ss:$16 sps:$4 sm:$0xff]   ;;  %v951_v25 = vld [vmem:[%s1114_s6 + $0x8] ss:$16 sps:$4 sm:$0xff]  }
  0x2c   : > { %v352_v27 = vld [vmem:[#allocation2 + $0x30] sm:$0xff]  ;;  %v354_v28 = vld [vmem:[#allocation2 + $0x18] sm:$0xff]  ;;  %v353_v31 = vld [vmem:[#allocation2] sm:$0xff] }
  0x2d   : > { %v355_v32 = vld [vmem:[#allocation2 + $0x10] sm:$0xff]  ;;  %v356_v37 = vld [vmem:[#allocation2 + $0x8] sm:$0xff]  ;;  %v357_v43 = vld [vmem:[#allocation2 + $0x20] sm:$0xff] }
  0x2e   : > { %498 = vmatpush1.bf16.msra.mxu0 %v932_v12  ;;  %541 = vmatpush1.bf16.msra.mxu1 %v933_v13  ;;  %v358_v38 = vld [vmem:[#allocation2 + $0x28] sm:$0xff]  ;;  %v359_v44 = vld [vmem:[#allocation2 + $0x38] sm:$0xff] }
  0x2f   : > { %499 = vmatprep.subr.bf16.mxu0 %v934_v14  ;;  %542 = vmatprep.subr.bf16.mxu1 %v936_v15 }
  0x32   : > { %500 = vmatpush1.bf16.msra.mxu0 %v938_v16  ;;  %543 = vmatpush1.bf16.msra.mxu1 %v939_v17 }
  0x33   : > { %501 = vmatprep.subr.bf16.mxu0 %v940_v18  ;;  %544 = vmatprep.subr.bf16.mxu1 %v942_v19 }
  0x36   : > { %502 = vmatpush1.bf16.msra.mxu0 %v944_v20  ;;  %545 = vmatpush1.bf16.msra.mxu1 %v945_v21 }
  0x37   : > { %503 = vmatprep.subr.bf16.mxu0 %v946_v22  ;;  %546 = vmatprep.subr.bf16.mxu1 %v948_v23 }
  0x3a   : > { %504 = vmatpush1.bf16.msra.mxu0 %v950_v24  ;;  %547 = vmatpush1.bf16.msra.mxu1 %v951_v25 }
  0x3d   : > { %851 = vmatmul.mubr.msk.bf16.vlgmr.msra.gmra.mxu0 %vm485_vm0, %v952_v26  ;;  %852 = vmatmul.mubr.msk.bf16.vlgmr.msra.gmra.mxu1 %vm485_vm0, %v952_v26 }
  0xfd   : > { %v523_v29 = vpop.f32.mrf.mxu0  ;;  %v566_v30 = vpop.f32.mrf.mxu1 }
  0xfe   : > { %v575_v33 = vadd.f32 %v523_v29, %v352_v27  ;;  %v577_v34 = vadd.f32 %v566_v30, %v354_v28 }
  0xff   : > { %v525_v35 = vpop.f32.mrf.mxu0  ;;  %v568_v36 = vpop.f32.mrf.mxu1 }
 0x100   : > { %583 = vst [vmem:[#allocation2 + $0x30] sm:$0xff] %v575_v33  ;;  %585 = vst [vmem:[#allocation2 + $0x18] sm:$0xff] %v577_v34  ;;  %v576_v39 = vadd.f32 %v525_v35, %v353_v31  ;;  %v578_v40 = vadd.f32 %v568_v36, %v355_v32 }
 0x101   : > { %v527_v41 = vpop.f32.mrf.mxu0  ;;  %v570_v42 = vpop.f32.mrf.mxu1 }
 0x102   : > { %584 = vst [vmem:[#allocation2] sm:$0xff] %v576_v39  ;;  %586 = vst [vmem:[#allocation2 + $0x10] sm:$0xff] %v578_v40  ;;  %v579_v45 = vadd.f32 %v527_v41, %v356_v37  ;;  %v581_v46 = vadd.f32 %v570_v42, %v358_v38  ;;  %594 = sbr.rel (%p853_p10) target bundleno = 285 (0x11d), region = 48 }
 0x103   : > { %v529_v47 = vpop.f32.mrf.mxu0  ;;  %v572_v48 = vpop.f32.mrf.mxu1 }
 0x104   : > { %587 = vst [vmem:[#allocation2 + $0x8] sm:$0xff] %v579_v45  ;;  %589 = vst [vmem:[#allocation2 + $0x28] sm:$0xff] %v581_v46  ;;  %v580_v49 = vadd.f32 %v529_v47, %v357_v43  ;;  %v582_v50 = vadd.f32 %v572_v48, %v359_v44 }
 0x106   : > { %588 = vst [vmem:[#allocation2 + $0x20] sm:$0xff] %v580_v49  ;;  %590 = vst [vmem:[#allocation2 + $0x38] sm:$0xff] %v582_v50 }
 0x107   : > { %v605_v51 = vlaneseq  ;;  %v659_v52 = vld [vmem:[%s1102_s19] sm:$0xff]  ;;  %v660_v54 = vld [vmem:[%s1102_s19 + $0x8] sm:$0xff]  ;;  %v1145_v55 = vld [vmem:[%s1102_s19 + $0x10] sm:$0xff]  ;;  %v642_v15 = vstv %s633_s7 }
 0x108   : > { %v595_v56 = vld [vmem:[#allocation2 + $0x30] sm:$0xff]  ;;  %v603_v57 = vld [vmem:[%s1188_s2] sm:$0xf]  ;;  %v663_v58 = vunpack.c.l.bf16 %v659_v52  ;;  %v1151_v0 = vld [vmem:[%s1102_s19 + $0x18] sm:$0xff]  ;;  %v664_v1 = vunpack.c.h.bf16 %v659_v52  ;;  %v665_v3 = vunpack.c.l.bf16 %v660_v54  ;;  %v666_v5 = vunpack.c.h.bf16 %v660_v54 }
 0x109   : > { %v606_v53 = vshrl.u32 %v605_v51, 7  ;;  %v596_v60 = vld [vmem:[#allocation2] sm:$0xff]  ;;  %v597_v2 = vld [vmem:[#allocation2 + $0x18] sm:$0xff]  ;;  %v598_v4 = vld [vmem:[#allocation2 + $0x10] sm:$0xff]  ;;  %v667_v7 = vunpack.c.l.bf16 %v1145_v55  ;;  %v668_v12 = vunpack.c.h.bf16 %v1145_v55  ;;  %v669_v17 = vunpack.c.l.bf16 %v1151_v0 }
 0x10a   : > { %v670_v18 = vunpack.c.h.bf16 %v1151_v0 }
 0x10b   : > { %v607_v59 = vsub.s32 0, %v606_v53  ;;  %v611_v61 = vsub.s32 1, %v606_v53  ;;  %v615_v62 = vsub.s32 2, %v606_v53  ;;  %v619_v63 = vsub.s32 3, %v606_v53  ;;  %v599_v6 = vld [vmem:[#allocation2 + $0x8] sm:$0xff] }
 0x10c   : > { %v601_v13 = vld [vmem:[#allocation2 + $0x28] sm:$0xff] }
 0x10d   : > { %v608_v8 = vrot.slane %v603_v57, %v607_v59  ;;  %v612_v9 = vrot.slane %v603_v57, %v611_v61  ;;  %v616_v10 = vrot.slane %v603_v57, %v615_v62  ;;  %v600_v11 = vld [vmem:[#allocation2 + $0x20] sm:$0xff]  ;;  %v602_v14 = vld [vmem:[#allocation2 + $0x38] sm:$0xff]  ;;  %v620_v16 = vrot.slane %v603_v57, %v619_v63 }
 0x10f   : > { %v625_v19 = vadd.f32 %v608_v8, %v595_v56  ;;  %v626_v20 = vadd.f32 %v612_v9, %v596_v60  ;;  %v627_v21 = vadd.f32 %v616_v10, %v597_v2  ;;  %v629_v22 = vadd.f32 %v608_v8, %v599_v6 }
 0x110   : > { %v628_v23 = vadd.f32 %v620_v16, %v598_v4  ;;  %v630_v24 = vadd.f32 %v612_v9, %v600_v11  ;;  %v631_v25 = vadd.f32 %v616_v10, %v601_v13  ;;  %v632_v26 = vadd.f32 %v620_v16, %v602_v14 }
 0x111   : > { %vm634_vm1 = vcmp.gt.f32.partialorder %v625_v19, 0.0  ;;  %v643_v27 = vmul.f32 %v642_v15, %v625_v19  ;;  %vm635_vm2 = vcmp.gt.f32.partialorder %v626_v20, 0.0  ;;  %v644_v28 = vmul.f32 %v642_v15, %v626_v20 }
 0x112   : > { %vm636_vm3 = vcmp.gt.f32.partialorder %v627_v21, 0.0  ;;  %v645_v29 = vmul.f32 %v642_v15, %v627_v21  ;;  %vm637_vm4 = vcmp.gt.f32.partialorder %v628_v23, 0.0  ;;  %v646_v30 = vmul.f32 %v642_v15, %v628_v23 }
 0x113   : > { %v651_v31 = vsel %vm634_vm1, %v625_v19, %v643_v27  ;;  %v652_v32 = vsel %vm635_vm2, %v626_v20, %v644_v28  ;;  %vm638_vm5 = vcmp.gt.f32.partialorder %v629_v22, 0.0  ;;  %v647_v33 = vmul.f32 %v642_v15, %v629_v22 }
 0x114   : > { %v671_v34 = vadd.f32 %v663_v58, %v651_v31  ;;  %v672_v35 = vadd.f32 %v664_v1, %v652_v32  ;;  %v653_v36 = vsel %vm636_vm3, %v627_v21, %v645_v29  ;;  %v654_v37 = vsel %vm637_vm4, %v628_v23, %v646_v30 }
 0x115   : > { %v673_v38 = vadd.f32 %v665_v3, %v653_v36  ;;  %v674_v39 = vadd.f32 %v666_v5, %v654_v37  ;;  %v655_v40 = vsel %vm638_vm5, %v629_v22, %v647_v33  ;;  %vm639_vm6 = vcmp.gt.f32.partialorder %v630_v24, 0.0 }
 0x116   : > { %679 = vst [vmem:[%s1107_s30] sm:$0xff] %v671_v34  ;;  %680 = vst [vmem:[%s1107_s30 + $0x8] sm:$0xff] %v672_v35  ;;  %v675_v41 = vadd.f32 %v667_v7, %v655_v40  ;;  %v648_v42 = vmul.f32 %v642_v15, %v630_v24  ;;  %vm640_vm7 = vcmp.gt.f32.partialorder %v631_v25, 0.0  ;;  %v649_v43 = vmul.f32 %v642_v15, %v631_v25 }
 0x117   : > { %681 = vst [vmem:[%s1107_s30 + $0x10] sm:$0xff] %v673_v38  ;;  %682 = vst [vmem:[%s1107_s30 + $0x18] sm:$0xff] %v674_v39  ;;  %vm641_vm8 = vcmp.gt.f32.partialorder %v632_v26, 0.0  ;;  %v650_v44 = vmul.f32 %v642_v15, %v632_v26 }
 0x118   : > { %683 = vst [vmem:[%s1107_s30 + $0x20] sm:$0xff] %v675_v41  ;;  %v656_v45 = vsel %vm639_vm6, %v630_v24, %v648_v42  ;;  %v657_v46 = vsel %vm640_vm7, %v631_v25, %v649_v43 }
 0x119   : > { %v676_v47 = vadd.f32 %v668_v12, %v656_v45  ;;  %v677_v48 = vadd.f32 %v669_v17, %v657_v46  ;;  %v658_v49 = vsel %vm641_vm8, %v632_v26, %v650_v44 }
 0x11a   : > { %v678_v50 = vadd.f32 %v670_v18, %v658_v49 }
 0x11b   : > { %684 = vst [vmem:[%s1107_s30 + $0x28] sm:$0xff] %v676_v47  ;;  %685 = vst [vmem:[%s1107_s30 + $0x30] sm:$0xff] %v677_v48 }
 0x11c   : > { %686 = vst [vmem:[%s1107_s30 + $0x38] sm:$0xff] %v678_v50 }
 0x11d PF: > { %s16_s26 = sadd.s32 1, %s1007_s26   ;;  %s1193_s10 = sld [smem:[#allocation4_spill]] }
 0x11e   : > { %p13_p11 = scmp.ge.s32.totalorder %s16_s26, 98   ;;  %s1194_s20 = smov %s995_s23 }
 0x11f   : > { %s1195_s21 = smov %s999_s24  ;;  %s1196_s22 = smov %s1003_s25 }
 0x120   : > { %s1197_s23 = smov %s1201_s3  ;;  %s1198_s24 = smov %s1205_s27 }
 0x121   :  { %15 = sbr.rel (!%p13_p11) target bundleno = 4 (0x4), region = 82 }
 0x123   : > { %s1199_s25 = smov %s1193_s10 }

// kernel: d_upblock_forward.6
= control target key start
LH: loop header
LB: loop body
LE: loop exit
PB: predicated region body
PF: predicated region fallthrough
CT: control target
= control target key end

     0   :  { %s2362_s20 = smov 0   ;;  %s2364_s21 = smov 0   ;;  %s2644_s0 = inlined_call_operand.vmem [shape: bf16[2,18,18,512], index: 0, kind: input, shape index: {}]   ;;  %s2645_s1 = inlined_call_operand.vmem [shape: bf16[9,512,32], index: 1, kind: input, shape index: {}]   ;;  %s2646_s2 = inlined_call_operand.vmem [shape: f32[1,32], index: 2, kind: input, shape index: {}]   ;;  %s2647_s3 = inlined_call_operand.<no memory space> [shape: f32[1,1], index: 3, kind: input, shape index: {}]   ;;  %s2648_s4 = inlined_call_operand.vmem [shape: bf16[2,16,16,32], index: 4, kind: input, shape index: {}]   ;;  %s2649_s5 = inlined_call_operand.vmem [shape: bf16[2,16,16,32], index: 5, kind: output, shape index: {}]  }
   0x1   :  { %10 = sst [smem:[#allocation3]] %s2647_s3  ;;  %s2366_s22 = smov 0  }
   0x2   :  { %s2368_s23 = smov 0   ;;  %s2370_s24 = smov 0  }
   0x3   :  { %s2372_s25 = smov 0   ;;  %s2374_s26 = smov 0  }
   0x4 LB: > { %s28_s3 = sadd.s32 1, %s2314_s23  ;;  %s31_s27 = sadd.s32 1, %s2318_s24  ;;  %s2326_s26 = sphi %s2374_s26, %s16_s26   ;;  %s2322_s25 = sphi %s2372_s25, %s2657_s25   ;;  %s2318_s24 = sphi %s2370_s24, %s2656_s24   ;;  %s2314_s23 = sphi %s2368_s23, %s2655_s23   ;;  %s2310_s22 = sphi %s2366_s22, %s2654_s22   ;;  %s2306_s21 = sphi %s2364_s21, %s2653_s21   ;;  %s2302_s20 = sphi %s2362_s20, %s2652_s20  }
   0x5   : > { %p29_p0 = scmp.ge.s32.totalorder %s28_s3, 3  ;;  %p1699_p1 = scmp.ge.s32.totalorder %s2326_s26, 1 }
   0x6   : > { %p235_p2 = scmp.lt.s32.totalorder %s2326_s26, 97  ;;  %s35_s28 = sadd.s32 1, %s2322_s25 }
   0x7   : > { %s2659_s3 = smov (%p29_p0, %s28_s3), 0  ;;  %s2661_s27 = smov (!%p29_p0, %s31_s27), %s2318_s24 }
   0x8   : > { %p236_p3 = pnand %p1699_p1, %p235_p2  ;;  %p33_p4 = scmp.ge.s32.totalorder %s2661_s27, 16 }
   0x9   : > { %s281_s29 = sadd.s32 (!%p236_p3), %s2302_s20, %s2306_s21  ;;  %p282_p6 = scmp.lt.s32.totalorder (!%p236_p3), %s2310_s22, 1 }
   0xa   : > { %s2663_s27 = smov (%p33_p4, %s2661_s27), 0  ;;  %s2665_s28 = smov (!%p33_p4, %s35_s28), %s2322_s25 }
   0xb   : > { %p37_p5 = scmp.ge.s32.totalorder %s2665_s28, 2  ;;  %239 = sbr.rel (%p236_p3) target bundleno = 351 (0x15f), region = 40 }
   0xc   : > { %p284_p7 = scmp.lt.s32.totalorder (!%p236_p3), %s281_s29, 17  ;;  %p294_p8 = scmp.lt.s32.totalorder (!%p236_p3), %s2306_s21, 15 }
   0xd   : > { %s2667_s28 = smov (%p37_p5, %s2665_s28), 0  ;;  %p1707_p9 = scmp.ne.s32.totalorder (!%p236_p3), %s2302_s20, 0 }
   0xe   : > { %2650 = sst [smem:[#allocation4_spill]] %s2667_s28 }
  0x10   : > { %s2669_s22 = smov (!%p282_p6, %s2310_s22), 1  ;;  %s2671_s29 = smov (!%p284_p7, %s281_s29), 17 }
  0x11   : > { %s2102_s30 = smul.u32 216, %s2669_s22  ;;  %s1702_s7 = sshll.u32 %s2669_s22, 5 }
  0x12   : > { %s2101_s6 = smul.u32 12, %s2671_s29  ;;  %s2673_s21 = smov (!%p294_p8, %s2306_s21), 15 }
  0x13   : > { %s1701_s10 = sshll.u32 %s2673_s21, 1  ;;  %314 = sbr.rel (%p1707_p9) target bundleno = 26 (0x1a), region = 44 }
  0x14   : > { %s288_s8 = sadd.s32 %s2102_s30, %s2101_s6  ;;  %s298_s14 = sadd.s32 %s1702_s7, %s1701_s10 }
  0x15   : > { %s1700_s9 = sshll.u32 %s288_s8, 2  ;;  %s1703_s15 = sshll.u32 %s298_s14, 2 }
  0x16   : > { %s2415_s13 = scalar_lea.vmem %s2644_s0, %s1700_s9  ;;  %s2420_s18 = scalar_lea.vmem %s2648_s4, %s1703_s15 }
  0x17   : > { %s2425_s22 = scalar_lea.vmem %s2649_s5, %s1703_s15 }
  0x18   : > { %vm315_vm0 = vcmask 261120   ;;  %v2328_v0 = vmov 0.0  }
  0x19   : > { %316 = vst.msk [vmem:[#allocation2] sm:$0xff] %vm315_vm0, %v2328_v0  ;;  %317 = vst.msk [vmem:[#allocation2 + $0x8] sm:$0xff] %vm315_vm0, %v2328_v0 }
  0x1a PF: > { %s1962_s21 = smul.u32 768, %s2302_s20  ;;  %v2430_v1 = vld [vmem:[%s2415_s13] sm:$0xff]  ;;  %v2433_v2 = vld [vmem:[%s2415_s13 + $0x10] sm:$0xff]  ;;  %v2436_v3 = vld [vmem:[%s2415_s13 + $0x8] sm:$0xff]  ;;  %vm793_vm1 = vsmask.f32 7424 }
  0x1b   : > { %v2440_v4 = vcombine.high %v2430_v1, %v2433_v2  ;;  %v2443_v5 = vld [vmem:[%s2415_s13 + $0x18] sm:$0xff]  ;;  %v2471_v21 = vld [vmem:[%s2415_s13 + $0x20] sm:$0x11]  ;;  %v2478_v26 = vld [vmem:[%s2415_s13 + $0x28] sm:$0x11]  ;;  %v2504_v53 = vcombine.low %v2430_v1, %v2433_v2  ;;  %vm1226_vm2 = vcmask 1046528  }
  0x1c   : > { %s2448_s30 = scalar_lea.vmem %s2645_s1, %s1962_s21  ;;  %v2452_v6 = vcombine.high %v2436_v3, %v2443_v5  ;;  %v1816_v28 = vcombine.high %v2471_v21, %v2471_v21  ;;  %v1818_v36 = vcombine.high %v2478_v26, %v2478_v26  ;;  %v2508_v56 = vcombine.low %v2436_v3, %v2443_v5  ;;  %p1956_p10 = scmp.ne.s32.totalorder %s2302_s20, 2 }
  0x1d   : > { %v2160_v7 = vld [vmem:[%s2448_s30 + $0x78] sm:$0xff]   ;;  %636 = vmatprep.mubr.bf16.mxu0 %v2440_v4  ;;  %v2164_v11 = vld [vmem:[%s2448_s30 + $0x70] sm:$0xff]   ;;  %v2168_v15 = vld [vmem:[%s2448_s30 + $0x68] sm:$0xff]   ;;  %v809_v31 = vshll.u32 %v2440_v4, 16  ;;  %v807_v33 = vshrl.u32 %v2440_v4, 16  ;;  %vm688_vm3 = vcmask 261120  }
  0x1e   : > { %v2161_v8 = vld [vmem:[%s2448_s30 + $0xf8] sm:$0xff]   ;;  %677 = vmatprep.mubr.bf16.mxu1 %v2452_v6  ;;  %1969 = vmatprep.subr.bf16.mxu0 %v2160_v7  ;;  %v2165_v12 = vld [vmem:[%s2448_s30 + $0xf0] sm:$0xff]   ;;  %v2169_v16 = vld [vmem:[%s2448_s30 + $0xe8] sm:$0xff]   ;;  %v814_v35 = vshll.u32 %v1816_v28, 16  ;;  %v833_v38 = vshll.u32 %v2452_v6, 16  ;;  %v831_v42 = vshrl.u32 %v2452_v6, 16 }
  0x1f   : > { %v2162_v9 = vld [vmem:[%s2448_s30 + $0x38] sm:$0xff]   ;;  %1991 = vmatprep.subr.bf16.mxu1 %v2161_v8  ;;  %v2166_v13 = vld [vmem:[%s2448_s30 + $0x30] sm:$0xff]   ;;  %v2170_v17 = vld [vmem:[%s2448_s30 + $0x28] sm:$0xff]   ;;  %v811_v40 = vrot.slane %v809_v31, 1  ;;  %v838_v44 = vshll.u32 %v1818_v36, 16  ;;  %v819_v31 = vshrl.u32 %v2508_v56, 16 }
  0x20   : > { %v2163_v10 = vld [vmem:[%s2448_s30 + $0xb8] sm:$0xff]   ;;  %1970 = vmatpush3.bf16.msra.mxu0 %v2162_v9  ;;  %v2167_v14 = vld [vmem:[%s2448_s30 + $0xb0] sm:$0xff]   ;;  %v2171_v18 = vld [vmem:[%s2448_s30 + $0xa8] sm:$0xff]   ;;  %v835_v46 = vrot.slane %v833_v38, 1  ;;  %v816_v51 = vrot.slane %v814_v35, 1  ;;  %s1536_s8 = sld [smem:[#allocation3]] (!%p1956_p10) }
  0x21   : > { %1992 = vmatpush3.bf16.msra.mxu1 %v2163_v10  ;;  %1971 = vmatprep.subr.bf16.mxu0 %v2164_v11  ;;  %v2172_v19 = vld [vmem:[%s2448_s30 + $0x60] sm:$0xff]   ;;  %v2176_v24 = vld [vmem:[%s2448_s30 + $0x58] sm:$0xff]   ;;  %v2180_v30 = vld [vmem:[%s2448_s30 + $0x50] sm:$0xff]   ;;  %v812_v50 = vor.u32 %v811_v40, %v807_v33  ;;  %v840_v55 = vrot.slane %v838_v44, 1 }
  0x22   : > { %1993 = vmatprep.subr.bf16.mxu1 %v2165_v12  ;;  %v2173_v20 = vld [vmem:[%s2448_s30 + $0xe0] sm:$0xff]   ;;  %v2177_v25 = vld [vmem:[%s2448_s30 + $0xd8] sm:$0xff]   ;;  %v2181_v32 = vld [vmem:[%s2448_s30 + $0xd0] sm:$0xff]   ;;  %v836_v54 = vor.u32 %v835_v46, %v831_v42 }
  0x23   : > { %v2174_v22 = vld [vmem:[%s2448_s30 + $0x20] sm:$0xff]   ;;  %v2178_v27 = vld [vmem:[%s2448_s30 + $0x18] sm:$0xff]   ;;  %v2182_v34 = vld [vmem:[%s2448_s30 + $0x10] sm:$0xff]   ;;  %v817_v60 = vsel %vm793_vm1, %v812_v50, %v816_v51 }
  0x24   : > { %1972 = vmatpush3.bf16.msra.mxu0 %v2166_v13  ;;  %v2175_v23 = vld [vmem:[%s2448_s30 + $0xa0] sm:$0xff]   ;;  %v2179_v29 = vld [vmem:[%s2448_s30 + $0x98] sm:$0xff]   ;;  %v2183_v37 = vld [vmem:[%s2448_s30 + $0x90] sm:$0xff]   ;;  %v841_v62 = vsel %vm793_vm1, %v836_v54, %v840_v55 }
  0x25   : > { %1994 = vmatpush3.bf16.msra.mxu1 %v2167_v14  ;;  %1973 = vmatprep.subr.bf16.mxu0 %v2168_v15  ;;  %v2184_v39 = vld [vmem:[%s2448_s30 + $0x48] sm:$0xff]   ;;  %v2188_v47 = vld [vmem:[%s2448_s30 + $0x40] sm:$0xff]   ;;  %v2196_v57 = vld [vmem:[%s2448_s30 + $0x178] sm:$0xff]   ;;  %v1815_v14 = vcombine.low %v2471_v21, %v2471_v21  ;;  %v1817_v21 = vcombine.low %v2478_v26, %v2478_v26 }
  0x26   : > { %1995 = vmatprep.subr.bf16.mxu1 %v2169_v16  ;;  %v2185_v41 = vld [vmem:[%s2448_s30 + $0xc8] sm:$0xff]   ;;  %v2189_v48 = vld [vmem:[%s2448_s30 + $0xc0] sm:$0xff]   ;;  %v2197_v58 = vld [vmem:[%s2448_s30 + $0x1f8] sm:$0xff]  }
  0x27   : > { %v2186_v43 = vld [vmem:[%s2448_s30 + $0x8] sm:$0xff]   ;;  %v2190_v49 = vld [vmem:[%s2448_s30] sm:$0xff]   ;;  %v2198_v59 = vld [vmem:[%s2448_s30 + $0x138] sm:$0xff]  }
  0x28   : > { %1974 = vmatpush3.bf16.msra.mxu0 %v2170_v17  ;;  %v2187_v45 = vld [vmem:[%s2448_s30 + $0x88] sm:$0xff]   ;;  %v2191_v52 = vld [vmem:[%s2448_s30 + $0x80] sm:$0xff]   ;;  %v2199_v61 = vld [vmem:[%s2448_s30 + $0x1b8] sm:$0xff]   ;;  %v797_v17 = vshll.u32 %v2504_v53, 16 }
  0x29   : > { %1996 = vmatpush3.bf16.msra.mxu1 %v2171_v18  ;;  %1975 = vmatprep.subr.bf16.mxu0 %v2172_v19  ;;  %v2200_v63 = vld [vmem:[%s2448_s30 + $0x170] sm:$0xff]   ;;  %v2204_v4 = vld [vmem:[%s2448_s30 + $0x168] sm:$0xff]   ;;  %v2208_v9 = vld [vmem:[%s2448_s30 + $0x160] sm:$0xff]   ;;  %v795_v19 = vshrl.u32 %v2504_v53, 16 }
  0x2a   : > { %1997 = vmatprep.subr.bf16.mxu1 %v2173_v20  ;;  %v2201_v0 = vld [vmem:[%s2448_s30 + $0x1f0] sm:$0xff]   ;;  %v2205_v6 = vld [vmem:[%s2448_s30 + $0x1e8] sm:$0xff]   ;;  %v2209_v10 = vld [vmem:[%s2448_s30 + $0x1e0] sm:$0xff]  }
  0x2b   : > { %v2202_v1 = vld [vmem:[%s2448_s30 + $0x130] sm:$0xff]   ;;  %v2206_v7 = vld [vmem:[%s2448_s30 + $0x128] sm:$0xff]   ;;  %v2210_v11 = vld [vmem:[%s2448_s30 + $0x120] sm:$0xff]  }
  0x2c   : > { %1976 = vmatpush3.bf16.msra.mxu0 %v2174_v22  ;;  %v2203_v3 = vld [vmem:[%s2448_s30 + $0x1b0] sm:$0xff]   ;;  %v2207_v8 = vld [vmem:[%s2448_s30 + $0x1a8] sm:$0xff]   ;;  %v2211_v12 = vld [vmem:[%s2448_s30 + $0x1a0] sm:$0xff]   ;;  %v802_v22 = vshll.u32 %v1815_v14, 16 }
  0x2d   : > { %1998 = vmatpush3.bf16.msra.mxu1 %v2175_v23  ;;  %1977 = vmatprep.subr.bf16.mxu0 %v2176_v24  ;;  %v2212_v13 = vld [vmem:[%s2448_s30 + $0x158] sm:$0xff]   ;;  %v2216_v20 = vld [vmem:[%s2448_s30 + $0x150] sm:$0xff]   ;;  %v2542_v23 = vld [vmem:[%s2415_s13] sm:$0xee] }
  0x2e   : > { %1999 = vmatprep.subr.bf16.mxu1 %v2177_v25  ;;  %v2213_v15 = vld [vmem:[%s2448_s30 + $0x1d8] sm:$0xff]   ;;  %v2217_v24 = vld [vmem:[%s2448_s30 + $0x1d0] sm:$0xff]   ;;  %v821_v25 = vshll.u32 %v2508_v56, 16  ;;  %v2220_v26 = vld [vmem:[%s2448_s30 + $0x148] sm:$0xff]   ;;  %v1917_v35 = vcombine.high %v2542_v23, %v2433_v2  ;;  %v1916_v14 = vcombine.low %v2542_v23, %v2433_v2 }
  0x2f   : > { %v2214_v16 = vld [vmem:[%s2448_s30 + $0x118] sm:$0xff]   ;;  %v2218_v28 = vld [vmem:[%s2448_s30 + $0x110] sm:$0xff]   ;;  %v2221_v33 = vld [vmem:[%s2448_s30 + $0x1c8] sm:$0xff]  }
  0x30   : > { %1978 = vmatpush3.bf16.msra.mxu0 %v2178_v27  ;;  %v2215_v18 = vld [vmem:[%s2448_s30 + $0x198] sm:$0xff]   ;;  %v2547_v27 = vld [vmem:[%s2415_s13 + $0x20] sm:$0x11]  ;;  %v2222_v36 = vld [vmem:[%s2448_s30 + $0x108] sm:$0xff]  }
  0x31   : > { %2000 = vmatpush3.bf16.msra.mxu1 %v2179_v29  ;;  %1979 = vmatprep.subr.bf16.mxu0 %v2180_v30  ;;  %v799_v29 = vrot.slane %v797_v17, 1  ;;  %v2219_v30 = vld [vmem:[%s2448_s30 + $0x190] sm:$0xff]   ;;  %v2223_v38 = vld [vmem:[%s2448_s30 + $0x188] sm:$0xff]   ;;  %v2224_v40 = vld [vmem:[%s2448_s30 + $0x140] sm:$0xff]   ;;  %v1920_v17 = vcombine.low %v2547_v27, %v2547_v27 }
  0x32   : > { %2001 = vmatprep.subr.bf16.mxu1 %v2181_v32  ;;  %v826_v32 = vshll.u32 %v1817_v21, 16  ;;  %v2226_v46 = vld [vmem:[%s2448_s30 + $0x100] sm:$0xff]   ;;  %v2232_v50 = vld [vmem:[%s2448_s30 + $0x278] sm:$0xff]  }
  0x33   : > { %v2235_v55 = vld [vmem:[%s2448_s30 + $0x2b8] sm:$0xff]   ;;  %v2260_v21 = vld [vmem:[%s2448_s30 + $0x240] sm:$0xff]   ;;  %v1228_v2 = vrot.slane %v1920_v17, 1 }
  0x34   : > { %1980 = vmatpush3.bf16.msra.mxu0 %v2182_v34  ;;  %v823_v34 = vrot.slane %v821_v25, 1  ;;  %v828_v42 = vrot.slane %v826_v32, 1  ;;  %v2261_v23 = vld [vmem:[%s2448_s30 + $0x2c0] sm:$0xff]  }
  0x35   : > { %2002 = vmatpush3.bf16.msra.mxu1 %v2183_v37  ;;  %1981 = vmatprep.subr.bf16.mxu0 %v2184_v39  ;;  %v1921_v37 = vcombine.high %v2547_v27, %v2547_v27  ;;  %v804_v39 = vrot.slane %v802_v22, 1  ;;  %v1227_v22 = vrot.slane %v1916_v14, 1  ;;  %v2262_v27 = vld [vmem:[%s2448_s30 + $0x200] sm:$0xff]  }
  0x36   : > { %2003 = vmatprep.subr.bf16.mxu1 %v2185_v41  ;;  %v800_v41 = vor.u32 %v799_v29, %v795_v19  ;;  %v824_v44 = vor.u32 %v823_v34, %v819_v31  ;;  %v2258_v19 = vld [vmem:[%s2448_s30 + $0x208] sm:$0xff]  }
  0x37   : > { %v1129_v29 = vld [vmem:[%s2415_s13 + $0x28] sm:$0x11] }
  0x38   : > { %1982 = vmatpush3.bf16.msra.mxu0 %v2186_v43  ;;  %v2225_v43 = vld [vmem:[%s2448_s30 + $0x1c0] sm:$0xff]   ;;  %v829_v51 = vsel %vm793_vm1, %v824_v44, %v828_v42  ;;  %v1923_v31 = vcombine.high %v1129_v29, %v1129_v29  ;;  %v1922_v32 = vcombine.low %v1129_v29, %v1129_v29 }
  0x39   : > { %2004 = vmatpush3.bf16.msra.mxu1 %v2187_v45  ;;  %1983 = vmatprep.subr.bf16.mxu0 %v2188_v47  ;;  %v1230_v45 = vrot.slane %v1917_v35, 1  ;;  %v1231_v47 = vrot.slane %v1921_v37, 1  ;;  %v390_v44 = vld [vmem:[#allocation2] sm:$0xff] }
  0x3a   : > { %2005 = vmatprep.subr.bf16.mxu1 %v2189_v48  ;;  %v2227_v48 = vld [vmem:[%s2448_s30 + $0x180] sm:$0xff]   ;;  %v1237_v34 = vrot.slane %v1923_v31, 1  ;;  %v1234_v35 = vrot.slane %v1922_v32, 1 }
  0x3b   : > { %v1232_v54 = vsel %vm1226_vm2, %v1230_v45, %v1231_v47 }
  0x3c   : > { %1984 = vmatpush3.bf16.msra.mxu0 %v2190_v49  ;;  %v805_v49 = vsel %vm793_vm1, %v800_v41, %v804_v39 }
  0x3d   : > { %2006 = vmatpush3.bf16.msra.mxu1 %v2191_v52  ;;  %2013 = vmatprep.subr.bf16.mxu0 %v2196_v57  ;;  %v2233_v52 = vld [vmem:[%s2448_s30 + $0x2f8] sm:$0xff]   ;;  %v2237_v57 = vld [vmem:[%s2448_s30 + $0x2f0] sm:$0xff]  }
  0x3e   : > { %2035 = vmatprep.subr.bf16.mxu1 %v2197_v58  ;;  %v2238_v58 = vld [vmem:[%s2448_s30 + $0x230] sm:$0xff]  }
  0x3f   : > { %637 = vmatmul.mubr.bf16.vlgmr.msra.gmra.mxu0 %v2504_v53  ;;  %v2234_v53 = vld [vmem:[%s2448_s30 + $0x238] sm:$0xff]  }
  0x40   : > { %678 = vmatmul.mubr.bf16.vlgmr.msra.gmra.mxu1 %v2508_v56  ;;  %2014 = vmatpush3.bf16.msra.mxu0 %v2198_v59  ;;  %v2236_v56 = vld [vmem:[%s2448_s30 + $0x270] sm:$0xff]  }
  0x41   : > { %2036 = vmatpush3.bf16.msra.mxu1 %v2199_v61  ;;  %1070 = vmatprep.mubr.bf16.mxu0 %v817_v60  ;;  %v2239_v59 = vld [vmem:[%s2448_s30 + $0x2b0] sm:$0xff]   ;;  %v2240_v60 = vld [vmem:[%s2448_s30 + $0x268] sm:$0xff]  }
  0x42   : > { %2015 = vmatprep.subr.bf16.mxu0 %v2200_v63  ;;  %1111 = vmatprep.mubr.bf16.mxu1 %v841_v62  ;;  %v2241_v61 = vld [vmem:[%s2448_s30 + $0x2e8] sm:$0xff]  }
  0x43   : > { %2037 = vmatprep.subr.bf16.mxu1 %v2201_v0  ;;  %v2242_v62 = vld [vmem:[%s2448_s30 + $0x228] sm:$0xff]   ;;  %v2244_v0 = vld [vmem:[%s2448_s30 + $0x260] sm:$0xff]  }
  0x44   : > { %2016 = vmatpush3.bf16.msra.mxu0 %v2202_v1  ;;  %v2243_v63 = vld [vmem:[%s2448_s30 + $0x2a8] sm:$0xff]   ;;  %v2245_v1 = vld [vmem:[%s2448_s30 + $0x2e0] sm:$0xff]  }
  0x45   : > { %2038 = vmatpush3.bf16.msra.mxu1 %v2203_v3  ;;  %2017 = vmatprep.subr.bf16.mxu0 %v2204_v4  ;;  %v2246_v3 = vld [vmem:[%s2448_s30 + $0x220] sm:$0xff]  }
  0x46   : > { %2039 = vmatprep.subr.bf16.mxu1 %v2205_v6  ;;  %v2247_v4 = vld [vmem:[%s2448_s30 + $0x2a0] sm:$0xff]   ;;  %v2248_v6 = vld [vmem:[%s2448_s30 + $0x258] sm:$0xff]  }
  0x48   : > { %2018 = vmatpush3.bf16.msra.mxu0 %v2206_v7  ;;  %v2249_v7 = vld [vmem:[%s2448_s30 + $0x2d8] sm:$0xff]  }
  0x49   : > { %2040 = vmatpush3.bf16.msra.mxu1 %v2207_v8  ;;  %2019 = vmatprep.subr.bf16.mxu0 %v2208_v9  ;;  %v2250_v8 = vld [vmem:[%s2448_s30 + $0x218] sm:$0xff]  }
  0x4a   : > { %2041 = vmatprep.subr.bf16.mxu1 %v2209_v10  ;;  %v2251_v9 = vld [vmem:[%s2448_s30 + $0x298] sm:$0xff]   ;;  %v2252_v10 = vld [vmem:[%s2448_s30 + $0x250] sm:$0xff]  }
  0x4c   : > { %2020 = vmatpush3.bf16.msra.mxu0 %v2210_v11  ;;  %v2253_v11 = vld [vmem:[%s2448_s30 + $0x2d0] sm:$0xff]  }
  0x4d   : > { %2042 = vmatpush3.bf16.msra.mxu1 %v2211_v12  ;;  %2021 = vmatprep.subr.bf16.mxu0 %v2212_v13  ;;  %v2254_v12 = vld [vmem:[%s2448_s30 + $0x210] sm:$0xff]  }
  0x4e   : > { %2043 = vmatprep.subr.bf16.mxu1 %v2213_v15  ;;  %v2255_v13 = vld [vmem:[%s2448_s30 + $0x290] sm:$0xff]   ;;  %v2256_v15 = vld [vmem:[%s2448_s30 + $0x248] sm:$0xff]  }
  0x50   : > { %2022 = vmatpush3.bf16.msra.mxu0 %v2214_v16  ;;  %v1125_v16 = vld [vmem:[%s2415_s13 + $0x8] sm:$0xee] }
  0x51   : > { %2044 = vmatpush3.bf16.msra.mxu1 %v2215_v18  ;;  %2023 = vmatprep.subr.bf16.mxu0 %v2216_v20  ;;  %v2257_v18 = vld [vmem:[%s2448_s30 + $0x2c8] sm:$0xff]   ;;  %v1918_v25 = vcombine.low %v1125_v16, %v2443_v5 }
  0x52   : > { %2045 = vmatprep.subr.bf16.mxu1 %v2217_v24  ;;  %v2259_v20 = vld [vmem:[%s2448_s30 + $0x288] sm:$0xff]   ;;  %v1919_v24 = vcombine.high %v1125_v16, %v2443_v5 }
  0x54   : > { %2024 = vmatpush3.bf16.msra.mxu0 %v2218_v28  ;;  %v2263_v28 = vld [vmem:[%s2448_s30 + $0x280] sm:$0xff]  }
  0x55   : > { %2046 = vmatpush3.bf16.msra.mxu1 %v2219_v30  ;;  %2025 = vmatprep.subr.bf16.mxu0 %v2220_v26  ;;  %v1229_v30 = vsel %vm1226_vm2, %v1227_v22, %v1228_v2  ;;  %v1236_v26 = vrot.slane %v1919_v24, 1 }
  0x56   : > { %2047 = vmatprep.subr.bf16.mxu1 %v2221_v33  ;;  %v1233_v33 = vrot.slane %v1918_v25, 1 }
  0x58   : > { %2026 = vmatpush3.bf16.msra.mxu0 %v2222_v36  ;;  %v1238_v36 = vsel %vm1226_vm2, %v1236_v26, %v1237_v34  ;;  %v1235_v5 = vsel %vm1226_vm2, %v1233_v33, %v1234_v35 }
  0x59   : > { %2048 = vmatpush3.bf16.msra.mxu1 %v2223_v38  ;;  %2027 = vmatprep.subr.bf16.mxu0 %v2224_v40 }
  0x5a   : > { %2049 = vmatprep.subr.bf16.mxu1 %v2225_v43 }
  0x5c   : > { %2028 = vmatpush3.bf16.msra.mxu0 %v2226_v46 }
  0x5d   : > { %2050 = vmatpush3.bf16.msra.mxu1 %v2227_v48  ;;  %2057 = vmatprep.subr.bf16.mxu0 %v2232_v50 }
  0x5e   : > { %2079 = vmatprep.subr.bf16.mxu1 %v2233_v52  ;;  %v391_v52 = vld [vmem:[#allocation2 + $0x8] sm:$0xff] }
  0x5f   : > { %1071 = vmatmul.mubr.bf16.vlgmr.msra.gmra.mxu0 %v805_v49 }
  0x60   : > { %1112 = vmatmul.mubr.bf16.vlgmr.msra.gmra.mxu1 %v829_v51  ;;  %2058 = vmatpush3.bf16.msra.mxu0 %v2234_v53 }
  0x61   : > { %2080 = vmatpush3.bf16.msra.mxu1 %v2235_v55  ;;  %1467 = vmatprep.mubr.bf16.mxu0 %v1232_v54 }
  0x62   : > { %2059 = vmatprep.subr.bf16.mxu0 %v2236_v56  ;;  %2081 = vmatprep.subr.bf16.mxu1 %v2237_v57 }
  0x63   : > { %1508 = vmatprep.mubr.bf16.mxu1 %v1238_v36 }
  0x64   : > { %2060 = vmatpush3.bf16.msra.mxu0 %v2238_v58 }
  0x65   : > { %2082 = vmatpush3.bf16.msra.mxu1 %v2239_v59  ;;  %2061 = vmatprep.subr.bf16.mxu0 %v2240_v60 }
  0x66   : > { %2083 = vmatprep.subr.bf16.mxu1 %v2241_v61 }
  0x68   : > { %2062 = vmatpush3.bf16.msra.mxu0 %v2242_v62 }
  0x69   : > { %2084 = vmatpush3.bf16.msra.mxu1 %v2243_v63  ;;  %2063 = vmatprep.subr.bf16.mxu0 %v2244_v0 }
  0x6a   : > { %2085 = vmatprep.subr.bf16.mxu1 %v2245_v1 }
  0x6c   : > { %2064 = vmatpush3.bf16.msra.mxu0 %v2246_v3 }
  0x6d   : > { %2086 = vmatpush3.bf16.msra.mxu1 %v2247_v4  ;;  %2065 = vmatprep.subr.bf16.mxu0 %v2248_v6 }
  0x6e   : > { %2087 = vmatprep.subr.bf16.mxu1 %v2249_v7 }
  0x70   : > { %2066 = vmatpush3.bf16.msra.mxu0 %v2250_v8 }
  0x71   : > { %2088 = vmatpush3.bf16.msra.mxu1 %v2251_v9  ;;  %2067 = vmatprep.subr.bf16.mxu0 %v2252_v10 }
  0x72   : > { %2089 = vmatprep.subr.bf16.mxu1 %v2253_v11 }
  0x74   : > { %2068 = vmatpush3.bf16.msra.mxu0 %v2254_v12 }
  0x75   : > { %2090 = vmatpush3.bf16.msra.mxu1 %v2255_v13  ;;  %2069 = vmatprep.subr.bf16.mxu0 %v2256_v15 }
  0x76   : > { %2091 = vmatprep.subr.bf16.mxu1 %v2257_v18 }
  0x78   : > { %2070 = vmatpush3.bf16.msra.mxu0 %v2258_v19 }
  0x79   : > { %2092 = vmatpush3.bf16.msra.mxu1 %v2259_v20  ;;  %2071 = vmatprep.subr.bf16.mxu0 %v2260_v21 }
  0x7a   : > { %2093 = vmatprep.subr.bf16.mxu1 %v2261_v23 }
  0x7c   : > { %2072 = vmatpush3.bf16.msra.mxu0 %v2262_v27 }
  0x7d   : > { %2094 = vmatpush3.bf16.msra.mxu1 %v2263_v28 }
  0x7f   : > { %1468 = vmatmul.mubr.bf16.vlgmr.msra.gmra.mxu0 %v1229_v30 }
  0x80   : > { %1509 = vmatmul.mubr.bf16.vlgmr.msra.gmra.mxu1 %v1235_v5 }
  0xff   : > { %v1985_v37 = vpop.f32.mrf.mxu0 }
 0x100   : > { %v2007_v38 = vpop.f32.mrf.mxu1 }
 0x101   : > { %v1986_v39 = vpop.f32.mrf.mxu0 }
 0x102   : > { %v1987_v40 = vadd.f32 %v1986_v39, %v1985_v37  ;;  %v2008_v41 = vpop.f32.mrf.mxu1 }
 0x103   : > { %v2009_v42 = vadd.f32 %v2008_v41, %v2007_v38  ;;  %v1988_v43 = vpop.f32.mrf.mxu0 }
 0x104   : > { %v2010_v45 = vpop.f32.mrf.mxu1 }
 0x105   : > { %v680_v46 = vadd.f32 %v2009_v42, %v1987_v40  ;;  %v1989_v47 = vpop.f32.mrf.mxu0 }
 0x106   : > { %v1990_v48 = vadd.f32 %v1989_v47, %v1988_v43  ;;  %v2011_v49 = vpop.f32.mrf.mxu1 }
 0x107   : > { %v686_v50 = vadd.f32 %v680_v46, %v390_v44  ;;  %v2012_v51 = vadd.f32 %v2011_v49, %v2010_v45 }
 0x109   : > { %689 = vst.msk [vmem:[#allocation2] sm:$0xff] %vm688_vm3, %v686_v50  ;;  %v683_v53 = vadd.f32 %v2012_v51, %v1990_v48 }
 0x10b   : > { %v687_v54 = vadd.f32 %v683_v53, %v391_v52 }
 0x10d   : > { %690 = vst.msk [vmem:[#allocation2 + $0x8] sm:$0xff] %vm688_vm3, %v687_v54 }
 0x110   : > { %v765_v1 = vld [vmem:[#allocation2] sm:$0xff] }
 0x114   : > { %v766_v9 = vld [vmem:[#allocation2 + $0x8] sm:$0xff] }
 0x11f   : > { %v2029_v55 = vpop.f32.mrf.mxu0 }
 0x120   : > { %v2051_v56 = vpop.f32.mrf.mxu1 }
 0x121   : > { %v2030_v57 = vpop.f32.mrf.mxu0 }
 0x122   : > { %v2031_v58 = vadd.f32 %v2030_v57, %v2029_v55  ;;  %v2052_v59 = vpop.f32.mrf.mxu1 }
 0x123   : > { %v2053_v60 = vadd.f32 %v2052_v59, %v2051_v56  ;;  %v2032_v61 = vpop.f32.mrf.mxu0 }
 0x124   : > { %v2054_v62 = vpop.f32.mrf.mxu1 }
 0x125   : > { %v1114_v63 = vadd.f32 %v2053_v60, %v2031_v58  ;;  %v2033_v0 = vpop.f32.mrf.mxu0 }
 0x126   : > { %v2034_v3 = vadd.f32 %v2033_v0, %v2032_v61  ;;  %v2055_v4 = vpop.f32.mrf.mxu1 }
 0x127   : > { %v1120_v6 = vadd.f32 %v1114_v63, %v765_v1  ;;  %v2056_v7 = vadd.f32 %v2055_v4, %v2054_v62 }
 0x129   : > { %1122 = vst.msk [vmem:[#allocation2] sm:$0xff] %vm688_vm3, %v1120_v6  ;;  %v1117_v8 = vadd.f32 %v2056_v7, %v2034_v3 }
 0x12b   : > { %v1121_v10 = vadd.f32 %v1117_v8, %v766_v9 }
 0x12d   : > { %1123 = vst.msk [vmem:[#allocation2 + $0x8] sm:$0xff] %vm688_vm3, %v1121_v10 }
 0x130   : > { %v1198_v21 = vld [vmem:[#allocation2] sm:$0xff] }
 0x134   : > { %v1199_v27 = vld [vmem:[#allocation2 + $0x8] sm:$0xff] }
 0x13f   : > { %v2073_v11 = vpop.f32.mrf.mxu0 }
 0x140   : > { %v2095_v13 = vpop.f32.mrf.mxu1 }
 0x141   : > { %v2074_v12 = vpop.f32.mrf.mxu0 }
 0x142   : > { %v2075_v15 = vadd.f32 %v2074_v12, %v2073_v11  ;;  %v2096_v16 = vpop.f32.mrf.mxu1 }
 0x143   : > { %v2076_v14 = vpop.f32.mrf.mxu0  ;;  %v2097_v18 = vadd.f32 %v2096_v16, %v2095_v13 }
 0x144   : > { %v2098_v19 = vpop.f32.mrf.mxu1 }
 0x145   : > { %v2077_v17 = vpop.f32.mrf.mxu0  ;;  %v1511_v20 = vadd.f32 %v2097_v18, %v2075_v15 }
 0x146   : > { %v2078_v22 = vadd.f32 %v2077_v17, %v2076_v14  ;;  %v2099_v2 = vpop.f32.mrf.mxu1 }
 0x147   : > { %v1517_v23 = vadd.f32 %v1511_v20, %v1198_v21  ;;  %v2100_v24 = vadd.f32 %v2099_v2, %v2098_v19 }
 0x149   : > { %1519 = vst.msk [vmem:[#allocation2] sm:$0xff] %vm688_vm3, %v1517_v23  ;;  %v1514_v25 = vadd.f32 %v2100_v24, %v2078_v22  ;;  %1524 = sbr.rel (%p1956_p10) target bundleno = 351 (0x15f), region = 48 }
 0x14b   : > { %v1518_v28 = vadd.f32 %v1514_v25, %v1199_v27 }
 0x14d   : > { %1520 = vst.msk [vmem:[#allocation2 + $0x8] sm:$0xff] %vm688_vm3, %v1518_v28 }
 0x14e   : > { %v1957_v30 = vld [vmem:[%s2646_s2] ss:$0 sm:$0xff]  ;;  %v1539_v36 = vstv %s1536_s8  ;;  %vm1560_vm6 = vcmask 257024  }
 0x14f   : > { %v1966_v31 = vld [vmem:[%s2420_s18] sm:$0xff]  }
 0x150   : > { %v1525_v29 = vld [vmem:[#allocation2] sm:$0xff]  ;;  %v1967_v33 = vunpack.c.l.bf16 %v1966_v31  ;;  %v1968_v35 = vunpack.c.h.bf16 %v1966_v31 }
 0x151   : > { %v1534_v26 = vadd.f32 %v1957_v30, %v1525_v29 }
 0x152   : > { %v1548_v5 = vmul.f32 -1.0, %v1967_v33  ;;  %v1549_v37 = vmul.f32 -1.0, %v1968_v35 }
 0x153   : > { %vm1537_vm4 = vcmp.gt.f32.partialorder %v1534_v26, 0.0  ;;  %v1540_v38 = vmul.f32 %v1539_v36, %v1534_v26 }
 0x154   : > { %v1526_v32 = vld [vmem:[#allocation2 + $0x8] sm:$0xff] }
 0x155   : > { %v1535_v34 = vadd.f32 %v1957_v30, %v1526_v32  ;;  %v1542_v40 = vsel %vm1537_vm4, %v1534_v26, %v1540_v38 }
 0x156   : > { %v1550_v42 = vadd.f32 %v1548_v5, %v1542_v40 }
 0x157   : > { %vm1538_vm5 = vcmp.gt.f32.partialorder %v1535_v34, 0.0  ;;  %v1541_v39 = vmul.f32 %v1539_v36, %v1535_v34 }
 0x158   : > { %v1963_v44 = vpack.c.bf16 %v1550_v42, %v1550_v42 }
 0x159   : > { %v1543_v41 = vsel %vm1538_vm5, %v1535_v34, %v1541_v39 }
 0x15a   : > { %v1551_v43 = vadd.f32 %v1549_v37, %v1543_v41  ;;  %1561 = vst.msk [vmem:[%s2425_s22] sm:$0xf] %vm1560_vm6, %v1963_v44 }
 0x15c   : > { %v1964_v45 = vpack.c.bf16 %v1551_v43, %v1551_v43 }
 0x15e   : > { %1562 = vst.msk [vmem:[%s2425_s22 + $0x4] sm:$0xf] %vm1560_vm6, %v1964_v45 }
 0x15f PF: > { %s16_s26 = sadd.s32 1, %s2326_s26   ;;  %s2651_s9 = sld [smem:[#allocation4_spill]] }
 0x160   : > { %p13_p11 = scmp.ge.s32.totalorder %s16_s26, 98   ;;  %s2652_s20 = smov %s2314_s23 }
 0x161   : > { %s2653_s21 = smov %s2318_s24  ;;  %s2654_s22 = smov %s2322_s25 }
 0x162   : > { %s2655_s23 = smov %s2659_s3  ;;  %s2656_s24 = smov %s2663_s27 }
 0x163   :  { %15 = sbr.rel (!%p13_p11) target bundleno = 4 (0x4), region = 84 }
 0x165   : > { %s2657_s25 = smov %s2651_s9 }

</bundles_post_ra>
